<compile_context>
chip_gen: v6e
topology: v6e:2x2x1
jax: 0.10.0
libtpu: 0.0.40
codegen_flags: <defaults>
</compile_context>

<pallas_src>
import jax
import jax.numpy as jnp
from jax import lax
from jax.experimental import pallas as pl
from jax.experimental.pallas import tpu as pltpu

# ----------------------------- config (small) -------------------------------
B, S = 2, 8                       # batch, sequence length
H = 32                            # bert hidden = crf_hidden_size = bilstm_input_size
NUM_TAG = 8                       # num_tag (needs indices 0,1,2,3,6,7)
BILSTM_HIDDEN = 16                # bilstm_hidden_size (= conv out channels)
BILSTM_LAYERS = 2                 # so bilstm_hidden*num_layers == 2*bilstm_hidden
C = 2 * BILSTM_HIDDEN             # channels of padded_merged (cnn_1 ++ cnn_2) = 32
CC = BILSTM_HIDDEN                # single-conv channel count (=16)
MLP_HIDDEN = 32
ENT_OUT = 4                       # mlp_ent_output_size
REL_OUT = 6                       # mlp_rel_output_size
ER = ENT_OUT + REL_OUT            # 10
U = H + NUM_TAG + ER              # update_hidden_size = 50
VOCAB = 64
INTERACTION = 1
ATT_T = 1.0                       # args.attention_T
OUT_LANES = 128                   # lane-dense packed output width


# ------------------------- packed weight-slab layout ------------------------
def _build_slab_layout():
    layout, row = {}, 0

    def add(name, rows, cols):
        nonlocal row
        layout[name] = (row, rows, cols)
        row += -(-rows // 8) * 8          # keep every piece 8-sublane aligned

    add("enc_w", H, H)
    add("crf_w", H, NUM_TAG)
    add("cw0", H, CC)
    add("cw1", H, CC)
    add("cw2", H, CC)
    add("pool_w", CC, 2 * NUM_TAG)        # [ent_w_eff | rel_w_eff]
    add("tags", 2, NUM_TAG)               # row0 = ent tag mask, row1 = rel
    add("w1cat", CC, 2 * MLP_HIDDEN)      # [ew1_eff | rw1_eff]
    add("w2cat", MLP_HIDDEN, ER)          # [ew2 | rw2]
    add("uw_be", H, U)
    add("uw_slot", NUM_TAG, U)
    add("uw_er", ER, U)
    add("uw2", U, H)
    add("enc_b", 1, H)
    add("crf_b", 1, NUM_TAG)
    add("cb", 1, CC)
    add("b1cat", 1, 2 * MLP_HIDDEN)
    add("b2cat", 1, ER)
    add("ub1", 1, U)
    add("ub2", 1, H)
    return layout, -(-row // 8) * 8


_SLAB, SLAB_ROWS = _build_slab_layout()


def _piece(w_ref, name):
    r0, rows, cols = _SLAB[name]
    return w_ref[r0:r0 + rows, 0:cols]    # static ref slice: cheap VMEM load


# ----------------------------- fused Pallas kernel ---------------------------
def _fused_kernel(len_ref, alpha_ref,                  # scalar prefetch (SMEM)
                  emb_ref, w_ref,                      # VMEM inputs
                  out_ref):                            # packed VMEM output
    b = pl.program_id(0)
    # Deliberate deviation: all-padding examples (length 0) are clamped to 1.
    L = jnp.maximum(len_ref[b], 1)
    ent_alpha = alpha_ref[0]
    rel_alpha = alpha_ref[1]
    inv_t = jnp.float32(1.0 / ATT_T)
    neg = jnp.float32(-1e30)

    emb = emb_ref[0]                                   # (S, H)

    g = lambda name: _piece(w_ref, name)
    enc_w, enc_b = g("enc_w"), g("enc_b")
    crf_w, crf_b = g("crf_w"), g("crf_b")
    cw0, cw1, cw2, cb = g("cw0"), g("cw1"), g("cw2"), g("cb")
    pool_w, tags = g("pool_w"), g("tags")
    w1cat, b1cat = g("w1cat"), g("b1cat")
    w2cat, b2cat = g("w2cat"), g("b2cat")
    uw_be, uw_slot, uw_er = g("uw_be"), g("uw_slot"), g("uw_er")
    uw2, ub1, ub2 = g("uw2"), g("ub1"), g("ub2")

    # --- synthetic BERT projection (stand-in for bert-base-chinese) ---
    bert_encode = jnp.tanh(
        jnp.dot(emb, enc_w, preferred_element_type=jnp.float32) + enc_b)   # (S, H)

    # masks / constants shared by both attention branches and all iterations
    col_mask = lax.broadcasted_iota(jnp.int32, (S, S), 1) < L
    seq_mask = lax.broadcasted_iota(jnp.int32, (1, S), 1) < L
    row_mask = lax.broadcasted_iota(jnp.int32, (S, 1), 0) < L
    head_row = lax.broadcasted_iota(jnp.int32, (2, 1), 0)
    alpha_col = jnp.where(head_row == 0, ent_alpha, rel_alpha)            # (2, 1)
    zrow = jnp.zeros((1, H), jnp.float32)

    def masked_softmax(x, mask, axis):
        x = jnp.where(mask, x * inv_t, neg)
        x = x - jnp.max(x, axis=axis, keepdims=True)
        e = jnp.where(mask, jnp.exp(x), 0.0)
        return e / jnp.sum(e, axis=axis, keepdims=True)   # exact normalisation

    slot = er = None
    for it in range(INTERACTION + 1):                  # static unroll (2 iters)
        # CRF encoder classifier (+ dropout == identity in eval)
        slot = jnp.dot(bert_encode, crf_w,
                       preferred_element_type=jnp.float32) + crf_b        # (S, T)
        slot_t = slot.T                                                    # (T, S)

        # Conv1d(k=3, pad=1): sublane-shifted taps, three accumulated matmuls.
        merged = bert_encode + emb                                         # (S, H)
        m_prev = jnp.concatenate([zrow, merged[:S - 1, :]], axis=0)        # x[t-1]
        m_next = jnp.concatenate([merged[1:, :], zrow], axis=0)            # x[t+1]
        c = (jnp.dot(m_prev, cw0, preferred_element_type=jnp.float32)
             + jnp.dot(merged, cw1, preferred_element_type=jnp.float32)
             + jnp.dot(m_next, cw2, preferred_element_type=jnp.float32)
             + cb)
        c = jnp.maximum(c, 0.0)                                            # (S, CC)
        # padded_merged == concat([c, c]); the duplicated channels are folded
        # into pool_w / w1cat at pack time (valid only while the reference keeps
        # feeding cnn_encoder_1's output into both branches).

        # --- fused ent/rel soft-attention pooling ---
        a1 = jnp.dot(c, pool_w, preferred_element_type=jnp.float32)        # (S, 2T)
        att_ent = jnp.dot(a1[:, :NUM_TAG], slot_t,
                          preferred_element_type=jnp.float32)              # (S, S)
        att_rel = jnp.dot(a1[:, NUM_TAG:], slot_t,
                          preferred_element_type=jnp.float32)
        p_ent = masked_softmax(att_ent, col_mask, -1)
        p_rel = masked_softmax(att_rel, col_mask, -1)

        ssel = jnp.dot(tags, slot_t, preferred_element_type=jnp.float32)   # (2, S)
        ssm = masked_softmax(ssel, seq_mask, -1)
        rs_ent = jnp.sum(p_ent * ssm[0:1, :], axis=-1, keepdims=True)      # (S, 1)
        rs_rel = jnp.sum(p_rel * ssm[1:2, :], axis=-1, keepdims=True)
        rowsum = jnp.concatenate([rs_ent, rs_rel], axis=1)                 # (S, 2)
        attw = masked_softmax(rowsum, row_mask, 0)                         # (S, 2)
        pools = jnp.dot(attw.T, c, preferred_element_type=jnp.float32)     # (2, CC)

        # --- fused ent/rel MLP heads: Linear -> PReLU -> Dropout(id) -> Linear
        h1 = jnp.dot(pools, w1cat, preferred_element_type=jnp.float32) + b1cat
        h = jnp.where(head_row == 0, h1[:, :MLP_HIDDEN], h1[:, MLP_HIDDEN:])
        h = jnp.where(h >= 0.0, h, alpha_col * h)                          # PReLU
        o2 = jnp.dot(h, w2cat, preferred_element_type=jnp.float32) + b2cat  # (2, ER)
        ent_cls = o2[0:1, :ENT_OUT]                                        # (1, 4)
        rel_cls = o2[1:2, ENT_OUT:]                                        # (1, 6)
        er = jnp.concatenate([ent_cls, rel_cls], axis=1)                   # (1, 10)

        if it < INTERACTION:
            # update MLP on concat([bert_encode, slot, ent, rel]) realised as
            # split matmuls (ent/rel rows broadcast over the sequence).
            hh = (jnp.dot(bert_encode, uw_be, preferred_element_type=jnp.float32)
                  + jnp.dot(slot, uw_slot, preferred_element_type=jnp.float32)
                  + jnp.dot(er, uw_er, preferred_element_type=jnp.float32)
                  + ub1)                                                   # (S, U)
            hh = jnp.maximum(hh, 0.0)
            bert_encode = jnp.dot(hh, uw2,
                                  preferred_element_type=jnp.float32) + ub2

    # one lane-dense (S, 128) store: slot | [ent,rel] on row 0 | zero padding
    er_rows = jnp.concatenate(
        [er, jnp.zeros((S - 1, ER), jnp.float32)], axis=0)                 # (S, 10)
    pad = jnp.zeros((S, OUT_LANES - NUM_TAG - ER), jnp.float32)
    packed = jnp.concatenate([slot, er_rows, pad], axis=1)                 # (S, 128)
    out_ref[...] = packed.reshape(1, S, OUT_LANES)


# ----------------------------- wrapper ---------------------------------------
def _pack_weight_slab(params):
    def put(slab, name, arr):
        arr = jnp.asarray(arr, jnp.float32)
        if arr.ndim == 1:
            arr = arr.reshape(1, -1)
        r0, _, _ = _SLAB[name]
        return slab.at[r0:r0 + arr.shape[0], 0:arr.shape[1]].set(arr)

    cw = params["cnn1_w"]                     # PyTorch Conv1d layout (Cout, Cin, K)

    # fold the duplicated cnn channels (padded_merged == [c, c]) into the
    # attention / first-MLP-layer weights (valid for the reference's cnn_2 bug).
    ent_w_eff = params["ent_w"][:CC] + params["ent_w"][CC:]
    rel_w_eff = params["rel_w"][:CC] + params["rel_w"][CC:]
    ew1 = params["ent_mlp"]["w1"][:CC] + params["ent_mlp"]["w1"][CC:]
    rw1 = params["rel_mlp"]["w1"][:CC] + params["rel_mlp"]["w1"][CC:]

    ent_tag = jnp.zeros((NUM_TAG,), jnp.float32).at[jnp.array([0, 1, 6, 7])].set(1.0)
    rel_tag = jnp.zeros((NUM_TAG,), jnp.float32).at[jnp.array([2, 3])].set(1.0)

    uw1 = params["upd_w1"]
    pieces = {
        "enc_w": params["enc_w"], "enc_b": params["enc_b"],
        "crf_w": params["crf_w"], "crf_b": params["crf_b"],
        "cw0": cw[:, :, 0].T, "cw1": cw[:, :, 1].T, "cw2": cw[:, :, 2].T,
        "cb": params["cnn1_b"],
        "pool_w": jnp.concatenate([ent_w_eff, rel_w_eff], axis=1),
        "tags": jnp.stack([ent_tag, rel_tag], axis=0),
        "w1cat": jnp.concatenate([ew1, rw1], axis=1),
        "b1cat": jnp.concatenate([params["ent_mlp"]["b1"], params["rel_mlp"]["b1"]]),
        "w2cat": jnp.concatenate([params["ent_mlp"]["w2"], params["rel_mlp"]["w2"]], axis=1),
        "b2cat": jnp.concatenate([params["ent_mlp"]["b2"], params["rel_mlp"]["b2"]]),
        "uw_be": uw1[:H],
        "uw_slot": uw1[H:H + NUM_TAG],
        "uw_er": uw1[H + NUM_TAG:],
        "uw2": params["upd_w2"],
        "ub1": params["upd_b1"], "ub2": params["upd_b2"],
    }
    slab = jnp.zeros((SLAB_ROWS, OUT_LANES), jnp.float32)
    for name, arr in pieces.items():
        slab = put(slab, name, arr)
    return slab


def multitask_kbqa_forward(params, input_ids, token_type_ids, attention_mask):
    # TODO(synk): pretrained 'bert-base-chinese' is replaced by a deterministic
    # synthetic stand-in (embedding lookup + in-kernel dense+tanh projection).
    emb = (params["word_emb"][input_ids]
           + params["type_emb"][token_type_ids]
           + params["pos_emb"][None, :, :]).astype(jnp.float32)          # (B, S, H)

    token_length = jnp.sum(attention_mask, axis=-1).astype(jnp.int32)    # (B,)
    alphas = jnp.stack([params["ent_mlp"]["alpha"],
                        params["rel_mlp"]["alpha"]]).astype(jnp.float32)  # (2,)
    slab = _pack_weight_slab(params)                                      # (SLAB_ROWS, 128)

    grid_spec = pltpu.PrefetchScalarGridSpec(
        num_scalar_prefetch=2,                   # token_length, alphas -> SMEM
        grid=(B,),
        in_specs=[
            pl.BlockSpec((1, S, H), lambda b, lens, alphas: (b, 0, 0)),             # per example
            pl.BlockSpec((SLAB_ROWS, OUT_LANES), lambda b, lens, alphas: (0, 0)),   # resident
        ],
        out_specs=pl.BlockSpec((1, S, OUT_LANES), lambda b, lens, alphas: (b, 0, 0)),
    )

    packed = pl.pallas_call(
        _fused_kernel,
        out_shape=jax.ShapeDtypeStruct((B, S, OUT_LANES), jnp.float32),
        grid_spec=grid_spec,
        compiler_params=pltpu.CompilerParams(dimension_semantics=("parallel",)),
    )(token_length, alphas, emb, slab)

    slot = packed[:, :, :NUM_TAG]
    ent = packed[:, 0, NUM_TAG:NUM_TAG + ENT_OUT]
    rel = packed[:, 0, NUM_TAG + ENT_OUT:NUM_TAG + ENT_OUT + REL_OUT]
    return slot, ent, rel


# ----------------------------- init & main -----------------------------------
def _init_params(key):
    ks = jax.random.split(key, 24)

    def nrm(k, shape, scale=0.1):
        return (scale * jax.random.normal(k, shape)).astype(jnp.float32)

    params = {
        "word_emb": nrm(ks[0], (VOCAB, H)),
        "type_emb": nrm(ks[1], (2, H)),
        "pos_emb":  nrm(ks[2], (S, H)),
        "enc_w": nrm(ks[3], (H, H)), "enc_b": nrm(ks[4], (H,)),
        "crf_w": nrm(ks[5], (H, NUM_TAG)), "crf_b": nrm(ks[6], (NUM_TAG,)),
        "cnn1_w": nrm(ks[7], (BILSTM_HIDDEN, H, 3)), "cnn1_b": nrm(ks[8], (BILSTM_HIDDEN,)),
        # created to mirror __init__ but unused in forward (as in the reference)
        "cnn2_w": nrm(ks[9], (BILSTM_HIDDEN, H, 5)), "cnn2_b": nrm(ks[10], (BILSTM_HIDDEN,)),
        "ent_w": nrm(ks[11], (BILSTM_HIDDEN * BILSTM_LAYERS, NUM_TAG)),
        "rel_w": nrm(ks[12], (BILSTM_HIDDEN * BILSTM_LAYERS, NUM_TAG)),
        "ent_mlp": {
            "w1": nrm(ks[13], (C, MLP_HIDDEN)), "b1": nrm(ks[14], (MLP_HIDDEN,)),
            "alpha": jnp.array(0.25, jnp.float32),
            "w2": nrm(ks[15], (MLP_HIDDEN, ENT_OUT)), "b2": nrm(ks[16], (ENT_OUT,)),
        },
        "rel_mlp": {
            "w1": nrm(ks[17], (C, MLP_HIDDEN)), "b1": nrm(ks[18], (MLP_HIDDEN,)),
            "alpha": jnp.array(0.25, jnp.float32),
            "w2": nrm(ks[19], (MLP_HIDDEN, REL_OUT)), "b2": nrm(ks[20], (REL_OUT,)),
        },
        "upd_w1": nrm(ks[21], (U, U)), "upd_b1": nrm(ks[22], (U,)),
        "upd_w2": nrm(ks[23], (U, H)), "upd_b2": jnp.zeros((H,), jnp.float32),
    }
    return params


if __name__ == "__main__":
    root = jax.random.PRNGKey(0)
    k_in, k_par = jax.random.split(root)

    input_ids = jax.random.randint(k_in, (B, S), 0, VOCAB, dtype=jnp.int32)
    token_type_ids = jnp.zeros((B, S), jnp.int32)
    # variable-length attention masks (lengths 8 and 5)
    attention_mask = jnp.array(
        [[1] * 8,
         [1] * 5 + [0] * 3], dtype=jnp.int32)

    params = _init_params(k_par)

    fwd = jax.jit(multitask_kbqa_forward)
    slot_filling_output, ent_cls_output, rel_cls_output = fwd(
        params, input_ids, token_type_ids, attention_mask)

    jax.block_until_ready((slot_filling_output, ent_cls_output, rel_cls_output))
    assert slot_filling_output.shape == (B, S, NUM_TAG)
    assert ent_cls_output.shape == (B, ENT_OUT)
    assert rel_cls_output.shape == (B, REL_OUT)
    print("KERNEL_OK")
</pallas_src>

<mosaic_0001>
module attributes {stable_mosaic.version = 11 : i64} {
  func.func @_fused_kernel(%arg0: i32, %arg1: memref<2xi32, #tpu.memory_space<smem>>, %arg2: memref<2xf32, #tpu.memory_space<smem>>, %arg3: memref<1x8x32xf32, #tpu.memory_space<vmem>>, %arg4: memref<400x128xf32, #tpu.memory_space<vmem>>, %arg5: memref<1x8x128xf32, #tpu.memory_space<vmem>>) attributes {dimension_semantics = [#tpu.dimension_semantics<parallel>], iteration_bounds = array<i64: 2>, scalar_prefetch = 2 : i64, scratch_operands = 0 : i64, tpu.core_type = #tpu.core_type<tc>, window_params = [{transform_indices = @transform_0, window_bounds = array<i64: 1, 8, 32>}, {pipeline_mode = #tpu.pipeline_mode<synchronous>, transform_indices = @transform_1, window_bounds = array<i64: 400, 128>}, {transform_indices = @transform_2, window_bounds = array<i64: 1, 8, 128>}]} {
    %0 = arith.index_cast %arg0 : i32 to index
    %1 = memref.load %arg1[%0] : memref<2xi32, #tpu.memory_space<smem>>
    %c1_i32 = arith.constant 1 : i32
    %2 = arith.maxsi %1, %c1_i32 : i32
    %c0 = arith.constant 0 : index
    %3 = memref.load %arg2[%c0] : memref<2xf32, #tpu.memory_space<smem>>
    %c1 = arith.constant 1 : index
    %4 = memref.load %arg2[%c1] : memref<2xf32, #tpu.memory_space<smem>>
    %c0_0 = arith.constant 0 : index
    %c0_1 = arith.constant 0 : index
    %c0_2 = arith.constant 0 : index
    %5 = vector.load %arg3[%c0_0, %c0_1, %c0_2] : memref<1x8x32xf32, #tpu.memory_space<vmem>>, vector<1x8x32xf32>
    %6 = vector.shape_cast %5 : vector<1x8x32xf32> to vector<8x32xf32>
    %c0_3 = arith.constant 0 : index
    %c0_4 = arith.constant 0 : index
    %7 = vector.load %arg4[%c0_3, %c0_4] : memref<400x128xf32, #tpu.memory_space<vmem>>, vector<32x32xf32>
    %c344 = arith.constant 344 : index
    %c0_5 = arith.constant 0 : index
    %8 = vector.load %arg4[%c344, %c0_5] : memref<400x128xf32, #tpu.memory_space<vmem>>, vector<1x32xf32>
    %c32 = arith.constant 32 : index
    %c0_6 = arith.constant 0 : index
    %9 = vector.load %arg4[%c32, %c0_6] : memref<400x128xf32, #tpu.memory_space<vmem>>, vector<32x8xf32>
    %c352 = arith.constant 352 : index
    %c0_7 = arith.constant 0 : index
    %10 = vector.load %arg4[%c352, %c0_7] : memref<400x128xf32, #tpu.memory_space<vmem>>, vector<1x8xf32>
    %c64 = arith.constant 64 : index
    %c0_8 = arith.constant 0 : index
    %11 = vector.load %arg4[%c64, %c0_8] : memref<400x128xf32, #tpu.memory_space<vmem>>, vector<32x16xf32>
    %c96 = arith.constant 96 : index
    %c0_9 = arith.constant 0 : index
    %12 = vector.load %arg4[%c96, %c0_9] : memref<400x128xf32, #tpu.memory_space<vmem>>, vector<32x16xf32>
    %c128 = arith.constant 128 : index
    %c0_10 = arith.constant 0 : index
    %13 = vector.load %arg4[%c128, %c0_10] : memref<400x128xf32, #tpu.memory_space<vmem>>, vector<32x16xf32>
    %c360 = arith.constant 360 : index
    %c0_11 = arith.constant 0 : index
    %14 = vector.load %arg4[%c360, %c0_11] : memref<400x128xf32, #tpu.memory_space<vmem>>, vector<1x16xf32>
    %c160 = arith.constant 160 : index
    %c0_12 = arith.constant 0 : index
    %15 = vector.load %arg4[%c160, %c0_12] : memref<400x128xf32, #tpu.memory_space<vmem>>, vector<16x16xf32>
    %c176 = arith.constant 176 : index
    %c0_13 = arith.constant 0 : index
    %16 = vector.load %arg4[%c176, %c0_13] : memref<400x128xf32, #tpu.memory_space<vmem>>, vector<2x8xf32>
    %c184 = arith.constant 184 : index
    %c0_14 = arith.constant 0 : index
    %17 = vector.load %arg4[%c184, %c0_14] : memref<400x128xf32, #tpu.memory_space<vmem>>, vector<16x64xf32>
    %c368 = arith.constant 368 : index
    %c0_15 = arith.constant 0 : index
    %18 = vector.load %arg4[%c368, %c0_15] : memref<400x128xf32, #tpu.memory_space<vmem>>, vector<1x64xf32>
    %c200 = arith.constant 200 : index
    %c0_16 = arith.constant 0 : index
    %19 = vector.load %arg4[%c200, %c0_16] : memref<400x128xf32, #tpu.memory_space<vmem>>, vector<32x10xf32>
    %c376 = arith.constant 376 : index
    %c0_17 = arith.constant 0 : index
    %20 = vector.load %arg4[%c376, %c0_17] : memref<400x128xf32, #tpu.memory_space<vmem>>, vector<1x10xf32>
    %c232 = arith.constant 232 : index
    %c0_18 = arith.constant 0 : index
    %21 = vector.load %arg4[%c232, %c0_18] : memref<400x128xf32, #tpu.memory_space<vmem>>, vector<32x50xf32>
    %c264 = arith.constant 264 : index
    %c0_19 = arith.constant 0 : index
    %22 = vector.load %arg4[%c264, %c0_19] : memref<400x128xf32, #tpu.memory_space<vmem>>, vector<8x50xf32>
    %c272 = arith.constant 272 : index
    %c0_20 = arith.constant 0 : index
    %23 = vector.load %arg4[%c272, %c0_20] : memref<400x128xf32, #tpu.memory_space<vmem>>, vector<10x50xf32>
    %c288 = arith.constant 288 : index
    %c0_21 = arith.constant 0 : index
    %24 = vector.load %arg4[%c288, %c0_21] : memref<400x128xf32, #tpu.memory_space<vmem>>, vector<50x32xf32>
    %c384 = arith.constant 384 : index
    %c0_22 = arith.constant 0 : index
    %25 = vector.load %arg4[%c384, %c0_22] : memref<400x128xf32, #tpu.memory_space<vmem>>, vector<1x50xf32>
    %c392 = arith.constant 392 : index
    %c0_23 = arith.constant 0 : index
    %26 = vector.load %arg4[%c392, %c0_23] : memref<400x128xf32, #tpu.memory_space<vmem>>, vector<1x32xf32>
    %cst = arith.constant dense<0.000000e+00> : vector<8x32xf32>
    %27 = tpu.matmul %6, %7, %cst {dimension_numbers = #tpu.dot_dimension_numbers<[1], [0], [0], [1], [0, 0, 1, 1], [], []>} : vector<8x32xf32>, vector<32x32xf32>, vector<8x32xf32> -> vector<8x32xf32>
    %28 = vector.broadcast %8 : vector<1x32xf32> to vector<8x32xf32>
    %29 = arith.addf %27, %28 : vector<8x32xf32>
    %30 = math.tanh %29 : vector<8x32xf32>
    %31 = tpu.iota {dimensions = array<i32: 1>} : vector<8x8xi32>
    %32 = vector.broadcast %2 : i32 to vector<8x8xi32>
    %33 = arith.cmpi slt, %31, %32 : vector<8x8xi32>
    %34 = tpu.iota {dimensions = array<i32: 1>} : vector<1x8xi32>
    %35 = vector.broadcast %2 : i32 to vector<1x8xi32>
    %36 = arith.cmpi slt, %34, %35 : vector<1x8xi32>
    %37 = tpu.iota {dimensions = array<i32: 0>} : vector<8x1xi32>
    %38 = vector.broadcast %2 : i32 to vector<8x1xi32>
    %39 = arith.cmpi slt, %37, %38 : vector<8x1xi32>
    %40 = tpu.iota {dimensions = array<i32: 0>} : vector<2x1xi32>
    %c0_i32 = arith.constant 0 : i32
    %41 = vector.broadcast %c0_i32 : i32 to vector<2x1xi32>
    %42 = arith.cmpi eq, %40, %41 : vector<2x1xi32>
    %43 = vector.broadcast %3 : f32 to vector<2x1xf32>
    %44 = vector.broadcast %4 : f32 to vector<2x1xf32>
    %45 = arith.select %42, %43, %44 : vector<2x1xi1>, vector<2x1xf32>
    %cst_24 = arith.constant 0.000000e+00 : f32
    %46 = vector.broadcast %cst_24 : f32 to vector<1x32xf32>
    %cst_25 = arith.constant dense<0.000000e+00> : vector<8x8xf32>
    %47 = tpu.matmul %30, %9, %cst_25 {dimension_numbers = #tpu.dot_dimension_numbers<[1], [0], [0], [1], [0, 0, 1, 1], [], []>} : vector<8x32xf32>, vector<32x8xf32>, vector<8x8xf32> -> vector<8x8xf32>
    %48 = vector.broadcast %10 : vector<1x8xf32> to vector<8x8xf32>
    %49 = arith.addf %47, %48 : vector<8x8xf32>
    %50 = tpu.transpose %49, [1, 0] : vector<8x8xf32> -> vector<8x8xf32>
    %51 = arith.addf %30, %6 : vector<8x32xf32>
    %52 = vector.extract_strided_slice %51 {offsets = [0, 0], sizes = [7, 32], strides = [1, 1]} : vector<8x32xf32> to vector<7x32xf32>
    %53 = tpu.concatenate %46, %52 in 0 : vector<1x32xf32>, vector<7x32xf32> -> vector<8x32xf32>
    %54 = vector.extract_strided_slice %51 {offsets = [1, 0], sizes = [7, 32], strides = [1, 1]} : vector<8x32xf32> to vector<7x32xf32>
    %55 = tpu.concatenate %54, %46 in 0 : vector<7x32xf32>, vector<1x32xf32> -> vector<8x32xf32>
    %cst_26 = arith.constant dense<0.000000e+00> : vector<8x16xf32>
    %56 = tpu.matmul %53, %11, %cst_26 {dimension_numbers = #tpu.dot_dimension_numbers<[1], [0], [0], [1], [0, 0, 1, 1], [], []>} : vector<8x32xf32>, vector<32x16xf32>, vector<8x16xf32> -> vector<8x16xf32>
    %cst_27 = arith.constant dense<0.000000e+00> : vector<8x16xf32>
    %57 = tpu.matmul %51, %12, %cst_27 {dimension_numbers = #tpu.dot_dimension_numbers<[1], [0], [0], [1], [0, 0, 1, 1], [], []>} : vector<8x32xf32>, vector<32x16xf32>, vector<8x16xf32> -> vector<8x16xf32>
    %58 = arith.addf %56, %57 : vector<8x16xf32>
    %cst_28 = arith.constant dense<0.000000e+00> : vector<8x16xf32>
    %59 = tpu.matmul %55, %13, %cst_28 {dimension_numbers = #tpu.dot_dimension_numbers<[1], [0], [0], [1], [0, 0, 1, 1], [], []>} : vector<8x32xf32>, vector<32x16xf32>, vector<8x16xf32> -> vector<8x16xf32>
    %60 = arith.addf %58, %59 : vector<8x16xf32>
    %61 = vector.broadcast %14 : vector<1x16xf32> to vector<8x16xf32>
    %62 = arith.addf %60, %61 : vector<8x16xf32>
    %cst_29 = arith.constant 0.000000e+00 : f32
    %63 = vector.broadcast %cst_29 : f32 to vector<8x16xf32>
    %64 = arith.maximumf %62, %63 : vector<8x16xf32>
    %cst_30 = arith.constant dense<0.000000e+00> : vector<8x16xf32>
    %65 = tpu.matmul %64, %15, %cst_30 {dimension_numbers = #tpu.dot_dimension_numbers<[1], [0], [0], [1], [0, 0, 1, 1], [], []>} : vector<8x16xf32>, vector<16x16xf32>, vector<8x16xf32> -> vector<8x16xf32>
    %66 = vector.extract_strided_slice %65 {offsets = [0, 0], sizes = [8, 8], strides = [1, 1]} : vector<8x16xf32> to vector<8x8xf32>
    %cst_31 = arith.constant dense<0.000000e+00> : vector<8x8xf32>
    %67 = tpu.matmul %66, %50, %cst_31 {dimension_numbers = #tpu.dot_dimension_numbers<[1], [0], [0], [1], [0, 0, 1, 1], [], []>} : vector<8x8xf32>, vector<8x8xf32>, vector<8x8xf32> -> vector<8x8xf32>
    %68 = vector.extract_strided_slice %65 {offsets = [0, 8], sizes = [8, 8], strides = [1, 1]} : vector<8x16xf32> to vector<8x8xf32>
    %cst_32 = arith.constant dense<0.000000e+00> : vector<8x8xf32>
    %69 = tpu.matmul %68, %50, %cst_32 {dimension_numbers = #tpu.dot_dimension_numbers<[1], [0], [0], [1], [0, 0, 1, 1], [], []>} : vector<8x8xf32>, vector<8x8xf32>, vector<8x8xf32> -> vector<8x8xf32>
    %cst_33 = arith.constant 1.000000e+00 : f32
    %70 = vector.broadcast %cst_33 : f32 to vector<8x8xf32>
    %71 = arith.mulf %67, %70 : vector<8x8xf32>
    %cst_34 = arith.constant -1.000000e+30 : f32
    %72 = vector.broadcast %cst_34 : f32 to vector<8x8xf32>
    %73 = arith.select %33, %71, %72 : vector<8x8xi1>, vector<8x8xf32>
    %cst_35 = arith.constant dense<0xFF800000> : vector<8xf32>
    %74 = vector.multi_reduction <maximumf>, %73, %cst_35 [1] : vector<8x8xf32> to vector<8xf32>
    %75 = vector.shape_cast %74 : vector<8xf32> to vector<8x1xf32>
    %76 = vector.broadcast %75 : vector<8x1xf32> to vector<8x8xf32>
    %77 = arith.subf %73, %76 : vector<8x8xf32>
    %78 = math.exp %77 : vector<8x8xf32>
    %cst_36 = arith.constant 0.000000e+00 : f32
    %79 = vector.broadcast %cst_36 : f32 to vector<8x8xf32>
    %80 = arith.select %33, %78, %79 : vector<8x8xi1>, vector<8x8xf32>
    %cst_37 = arith.constant dense<0.000000e+00> : vector<8xf32>
    %81 = vector.multi_reduction <add>, %80, %cst_37 [1] : vector<8x8xf32> to vector<8xf32>
    %82 = vector.shape_cast %81 : vector<8xf32> to vector<8x1xf32>
    %83 = vector.broadcast %82 : vector<8x1xf32> to vector<8x8xf32>
    %84 = arith.divf %80, %83 : vector<8x8xf32>
    %cst_38 = arith.constant 1.000000e+00 : f32
    %85 = vector.broadcast %cst_38 : f32 to vector<8x8xf32>
    %86 = arith.mulf %69, %85 : vector<8x8xf32>
    %cst_39 = arith.constant -1.000000e+30 : f32
    %87 = vector.broadcast %cst_39 : f32 to vector<8x8xf32>
    %88 = arith.select %33, %86, %87 : vector<8x8xi1>, vector<8x8xf32>
    %cst_40 = arith.constant dense<0xFF800000> : vector<8xf32>
    %89 = vector.multi_reduction <maximumf>, %88, %cst_40 [1] : vector<8x8xf32> to vector<8xf32>
    %90 = vector.shape_cast %89 : vector<8xf32> to vector<8x1xf32>
    %91 = vector.broadcast %90 : vector<8x1xf32> to vector<8x8xf32>
    %92 = arith.subf %88, %91 : vector<8x8xf32>
    %93 = math.exp %92 : vector<8x8xf32>
    %cst_41 = arith.constant 0.000000e+00 : f32
    %94 = vector.broadcast %cst_41 : f32 to vector<8x8xf32>
    %95 = arith.select %33, %93, %94 : vector<8x8xi1>, vector<8x8xf32>
    %cst_42 = arith.constant dense<0.000000e+00> : vector<8xf32>
    %96 = vector.multi_reduction <add>, %95, %cst_42 [1] : vector<8x8xf32> to vector<8xf32>
    %97 = vector.shape_cast %96 : vector<8xf32> to vector<8x1xf32>
    %98 = vector.broadcast %97 : vector<8x1xf32> to vector<8x8xf32>
    %99 = arith.divf %95, %98 : vector<8x8xf32>
    %cst_43 = arith.constant dense<0.000000e+00> : vector<2x8xf32>
    %100 = tpu.matmul %16, %50, %cst_43 {dimension_numbers = #tpu.dot_dimension_numbers<[1], [0], [0], [1], [0, 0, 1, 1], [], []>} : vector<2x8xf32>, vector<8x8xf32>, vector<2x8xf32> -> vector<2x8xf32>
    %cst_44 = arith.constant 1.000000e+00 : f32
    %101 = vector.broadcast %cst_44 : f32 to vector<2x8xf32>
    %102 = arith.mulf %100, %101 : vector<2x8xf32>
    %cst_45 = arith.constant -1.000000e+30 : f32
    %103 = vector.shape_cast %36 : vector<1x8xi1> to vector<1x8xi1>
    %104 = vector.broadcast %103 : vector<1x8xi1> to vector<2x8xi1>
    %105 = vector.broadcast %cst_45 : f32 to vector<2x8xf32>
    %106 = arith.select %104, %102, %105 : vector<2x8xi1>, vector<2x8xf32>
    %cst_46 = arith.constant dense<0xFF800000> : vector<2xf32>
    %107 = vector.multi_reduction <maximumf>, %106, %cst_46 [1] : vector<2x8xf32> to vector<2xf32>
    %108 = vector.shape_cast %107 : vector<2xf32> to vector<2x1xf32>
    %109 = vector.broadcast %108 : vector<2x1xf32> to vector<2x8xf32>
    %110 = arith.subf %106, %109 : vector<2x8xf32>
    %111 = math.exp %110 : vector<2x8xf32>
    %cst_47 = arith.constant 0.000000e+00 : f32
    %112 = vector.shape_cast %36 : vector<1x8xi1> to vector<1x8xi1>
    %113 = vector.broadcast %112 : vector<1x8xi1> to vector<2x8xi1>
    %114 = vector.broadcast %cst_47 : f32 to vector<2x8xf32>
    %115 = arith.select %113, %111, %114 : vector<2x8xi1>, vector<2x8xf32>
    %cst_48 = arith.constant dense<0.000000e+00> : vector<2xf32>
    %116 = vector.multi_reduction <add>, %115, %cst_48 [1] : vector<2x8xf32> to vector<2xf32>
    %117 = vector.shape_cast %116 : vector<2xf32> to vector<2x1xf32>
    %118 = vector.broadcast %117 : vector<2x1xf32> to vector<2x8xf32>
    %119 = arith.divf %115, %118 : vector<2x8xf32>
    %120 = vector.extract_strided_slice %119 {offsets = [0, 0], sizes = [1, 8], strides = [1, 1]} : vector<2x8xf32> to vector<1x8xf32>
    %121 = vector.broadcast %120 : vector<1x8xf32> to vector<8x8xf32>
    %122 = arith.mulf %84, %121 : vector<8x8xf32>
    %cst_49 = arith.constant dense<0.000000e+00> : vector<8xf32>
    %123 = vector.multi_reduction <add>, %122, %cst_49 [1] : vector<8x8xf32> to vector<8xf32>
    %124 = vector.shape_cast %123 : vector<8xf32> to vector<8x1xf32>
    %125 = vector.extract_strided_slice %119 {offsets = [1, 0], sizes = [1, 8], strides = [1, 1]} : vector<2x8xf32> to vector<1x8xf32>
    %126 = vector.broadcast %125 : vector<1x8xf32> to vector<8x8xf32>
    %127 = arith.mulf %99, %126 : vector<8x8xf32>
    %cst_50 = arith.constant dense<0.000000e+00> : vector<8xf32>
    %128 = vector.multi_reduction <add>, %127, %cst_50 [1] : vector<8x8xf32> to vector<8xf32>
    %129 = vector.shape_cast %128 : vector<8xf32> to vector<8x1xf32>
    %130 = tpu.concatenate %124, %129 in 1 : vector<8x1xf32>, vector<8x1xf32> -> vector<8x2xf32>
    %cst_51 = arith.constant 1.000000e+00 : f32
    %131 = vector.broadcast %cst_51 : f32 to vector<8x2xf32>
    %132 = arith.mulf %130, %131 : vector<8x2xf32>
    %cst_52 = arith.constant -1.000000e+30 : f32
    %133 = vector.shape_cast %39 : vector<8x1xi1> to vector<8x1xi1>
    %134 = vector.broadcast %133 : vector<8x1xi1> to vector<8x2xi1>
    %135 = vector.broadcast %cst_52 : f32 to vector<8x2xf32>
    %136 = arith.select %134, %132, %135 : vector<8x2xi1>, vector<8x2xf32>
    %cst_53 = arith.constant dense<0xFF800000> : vector<2xf32>
    %137 = vector.multi_reduction <maximumf>, %136, %cst_53 [0] : vector<8x2xf32> to vector<2xf32>
    %138 = vector.shape_cast %137 : vector<2xf32> to vector<1x2xf32>
    %139 = vector.broadcast %138 : vector<1x2xf32> to vector<8x2xf32>
    %140 = arith.subf %136, %139 : vector<8x2xf32>
    %141 = math.exp %140 : vector<8x2xf32>
    %cst_54 = arith.constant 0.000000e+00 : f32
    %142 = vector.shape_cast %39 : vector<8x1xi1> to vector<8x1xi1>
    %143 = vector.broadcast %142 : vector<8x1xi1> to vector<8x2xi1>
    %144 = vector.broadcast %cst_54 : f32 to vector<8x2xf32>
    %145 = arith.select %143, %141, %144 : vector<8x2xi1>, vector<8x2xf32>
    %cst_55 = arith.constant dense<0.000000e+00> : vector<2xf32>
    %146 = vector.multi_reduction <add>, %145, %cst_55 [0] : vector<8x2xf32> to vector<2xf32>
    %147 = vector.shape_cast %146 : vector<2xf32> to vector<1x2xf32>
    %148 = vector.broadcast %147 : vector<1x2xf32> to vector<8x2xf32>
    %149 = arith.divf %145, %148 : vector<8x2xf32>
    %150 = tpu.transpose %149, [1, 0] : vector<8x2xf32> -> vector<2x8xf32>
    %cst_56 = arith.constant dense<0.000000e+00> : vector<2x16xf32>
    %151 = tpu.matmul %150, %64, %cst_56 {dimension_numbers = #tpu.dot_dimension_numbers<[1], [0], [0], [1], [0, 0, 1, 1], [], []>} : vector<2x8xf32>, vector<8x16xf32>, vector<2x16xf32> -> vector<2x16xf32>
    %cst_57 = arith.constant dense<0.000000e+00> : vector<2x64xf32>
    %152 = tpu.matmul %151, %17, %cst_57 {dimension_numbers = #tpu.dot_dimension_numbers<[1], [0], [0], [1], [0, 0, 1, 1], [], []>} : vector<2x16xf32>, vector<16x64xf32>, vector<2x64xf32> -> vector<2x64xf32>
    %153 = vector.broadcast %18 : vector<1x64xf32> to vector<2x64xf32>
    %154 = arith.addf %152, %153 : vector<2x64xf32>
    %c0_i32_58 = arith.constant 0 : i32
    %155 = vector.broadcast %c0_i32_58 : i32 to vector<2x1xi32>
    %156 = arith.cmpi eq, %40, %155 : vector<2x1xi32>
    %157 = vector.extract_strided_slice %154 {offsets = [0, 0], sizes = [2, 32], strides = [1, 1]} : vector<2x64xf32> to vector<2x32xf32>
    %158 = vector.extract_strided_slice %154 {offsets = [0, 32], sizes = [2, 32], strides = [1, 1]} : vector<2x64xf32> to vector<2x32xf32>
    %159 = vector.shape_cast %156 : vector<2x1xi1> to vector<2x1xi1>
    %160 = vector.broadcast %159 : vector<2x1xi1> to vector<2x32xi1>
    %161 = arith.select %160, %157, %158 : vector<2x32xi1>, vector<2x32xf32>
    %cst_59 = arith.constant 0.000000e+00 : f32
    %162 = vector.broadcast %cst_59 : f32 to vector<2x32xf32>
    %163 = arith.cmpf oge, %161, %162 : vector<2x32xf32>
    %164 = vector.broadcast %45 : vector<2x1xf32> to vector<2x32xf32>
    %165 = arith.mulf %164, %161 : vector<2x32xf32>
    %166 = arith.select %163, %161, %165 : vector<2x32xi1>, vector<2x32xf32>
    %cst_60 = arith.constant dense<0.000000e+00> : vector<2x10xf32>
    %167 = tpu.matmul %166, %19, %cst_60 {dimension_numbers = #tpu.dot_dimension_numbers<[1], [0], [0], [1], [0, 0, 1, 1], [], []>} : vector<2x32xf32>, vector<32x10xf32>, vector<2x10xf32> -> vector<2x10xf32>
    %168 = vector.broadcast %20 : vector<1x10xf32> to vector<2x10xf32>
    %169 = arith.addf %167, %168 : vector<2x10xf32>
    %170 = vector.extract_strided_slice %169 {offsets = [0, 0], sizes = [1, 4], strides = [1, 1]} : vector<2x10xf32> to vector<1x4xf32>
    %171 = vector.extract_strided_slice %169 {offsets = [1, 4], sizes = [1, 6], strides = [1, 1]} : vector<2x10xf32> to vector<1x6xf32>
    %172 = tpu.concatenate %170, %171 in 1 : vector<1x4xf32>, vector<1x6xf32> -> vector<1x10xf32>
    %cst_61 = arith.constant dense<0.000000e+00> : vector<8x50xf32>
    %173 = tpu.matmul %30, %21, %cst_61 {dimension_numbers = #tpu.dot_dimension_numbers<[1], [0], [0], [1], [0, 0, 1, 1], [], []>} : vector<8x32xf32>, vector<32x50xf32>, vector<8x50xf32> -> vector<8x50xf32>
    %cst_62 = arith.constant dense<0.000000e+00> : vector<8x50xf32>
    %174 = tpu.matmul %49, %22, %cst_62 {dimension_numbers = #tpu.dot_dimension_numbers<[1], [0], [0], [1], [0, 0, 1, 1], [], []>} : vector<8x8xf32>, vector<8x50xf32>, vector<8x50xf32> -> vector<8x50xf32>
    %175 = arith.addf %173, %174 : vector<8x50xf32>
    %cst_63 = arith.constant dense<0.000000e+00> : vector<1x50xf32>
    %176 = tpu.matmul %172, %23, %cst_63 {dimension_numbers = #tpu.dot_dimension_numbers<[1], [0], [0], [1], [0, 0, 1, 1], [], []>} : vector<1x10xf32>, vector<10x50xf32>, vector<1x50xf32> -> vector<1x50xf32>
    %177 = vector.broadcast %176 : vector<1x50xf32> to vector<8x50xf32>
    %178 = arith.addf %175, %177 : vector<8x50xf32>
    %179 = vector.broadcast %25 : vector<1x50xf32> to vector<8x50xf32>
    %180 = arith.addf %178, %179 : vector<8x50xf32>
    %cst_64 = arith.constant 0.000000e+00 : f32
    %181 = vector.broadcast %cst_64 : f32 to vector<8x50xf32>
    %182 = arith.maximumf %180, %181 : vector<8x50xf32>
    %cst_65 = arith.constant dense<0.000000e+00> : vector<8x32xf32>
    %183 = tpu.matmul %182, %24, %cst_65 {dimension_numbers = #tpu.dot_dimension_numbers<[1], [0], [0], [1], [0, 0, 1, 1], [], []>} : vector<8x50xf32>, vector<50x32xf32>, vector<8x32xf32> -> vector<8x32xf32>
    %184 = vector.broadcast %26 : vector<1x32xf32> to vector<8x32xf32>
    %185 = arith.addf %183, %184 : vector<8x32xf32>
    %cst_66 = arith.constant dense<0.000000e+00> : vector<8x8xf32>
    %186 = tpu.matmul %185, %9, %cst_66 {dimension_numbers = #tpu.dot_dimension_numbers<[1], [0], [0], [1], [0, 0, 1, 1], [], []>} : vector<8x32xf32>, vector<32x8xf32>, vector<8x8xf32> -> vector<8x8xf32>
    %187 = vector.broadcast %10 : vector<1x8xf32> to vector<8x8xf32>
    %188 = arith.addf %186, %187 : vector<8x8xf32>
    %189 = tpu.transpose %188, [1, 0] : vector<8x8xf32> -> vector<8x8xf32>
    %190 = arith.addf %185, %6 : vector<8x32xf32>
    %191 = vector.extract_strided_slice %190 {offsets = [0, 0], sizes = [7, 32], strides = [1, 1]} : vector<8x32xf32> to vector<7x32xf32>
    %192 = tpu.concatenate %46, %191 in 0 : vector<1x32xf32>, vector<7x32xf32> -> vector<8x32xf32>
    %193 = vector.extract_strided_slice %190 {offsets = [1, 0], sizes = [7, 32], strides = [1, 1]} : vector<8x32xf32> to vector<7x32xf32>
    %194 = tpu.concatenate %193, %46 in 0 : vector<7x32xf32>, vector<1x32xf32> -> vector<8x32xf32>
    %cst_67 = arith.constant dense<0.000000e+00> : vector<8x16xf32>
    %195 = tpu.matmul %192, %11, %cst_67 {dimension_numbers = #tpu.dot_dimension_numbers<[1], [0], [0], [1], [0, 0, 1, 1], [], []>} : vector<8x32xf32>, vector<32x16xf32>, vector<8x16xf32> -> vector<8x16xf32>
    %cst_68 = arith.constant dense<0.000000e+00> : vector<8x16xf32>
    %196 = tpu.matmul %190, %12, %cst_68 {dimension_numbers = #tpu.dot_dimension_numbers<[1], [0], [0], [1], [0, 0, 1, 1], [], []>} : vector<8x32xf32>, vector<32x16xf32>, vector<8x16xf32> -> vector<8x16xf32>
    %197 = arith.addf %195, %196 : vector<8x16xf32>
    %cst_69 = arith.constant dense<0.000000e+00> : vector<8x16xf32>
    %198 = tpu.matmul %194, %13, %cst_69 {dimension_numbers = #tpu.dot_dimension_numbers<[1], [0], [0], [1], [0, 0, 1, 1], [], []>} : vector<8x32xf32>, vector<32x16xf32>, vector<8x16xf32> -> vector<8x16xf32>
    %199 = arith.addf %197, %198 : vector<8x16xf32>
    %200 = vector.broadcast %14 : vector<1x16xf32> to vector<8x16xf32>
    %201 = arith.addf %199, %200 : vector<8x16xf32>
    %cst_70 = arith.constant 0.000000e+00 : f32
    %202 = vector.broadcast %cst_70 : f32 to vector<8x16xf32>
    %203 = arith.maximumf %201, %202 : vector<8x16xf32>
    %cst_71 = arith.constant dense<0.000000e+00> : vector<8x16xf32>
    %204 = tpu.matmul %203, %15, %cst_71 {dimension_numbers = #tpu.dot_dimension_numbers<[1], [0], [0], [1], [0, 0, 1, 1], [], []>} : vector<8x16xf32>, vector<16x16xf32>, vector<8x16xf32> -> vector<8x16xf32>
    %205 = vector.extract_strided_slice %204 {offsets = [0, 0], sizes = [8, 8], strides = [1, 1]} : vector<8x16xf32> to vector<8x8xf32>
    %cst_72 = arith.constant dense<0.000000e+00> : vector<8x8xf32>
    %206 = tpu.matmul %205, %189, %cst_72 {dimension_numbers = #tpu.dot_dimension_numbers<[1], [0], [0], [1], [0, 0, 1, 1], [], []>} : vector<8x8xf32>, vector<8x8xf32>, vector<8x8xf32> -> vector<8x8xf32>
    %207 = vector.extract_strided_slice %204 {offsets = [0, 8], sizes = [8, 8], strides = [1, 1]} : vector<8x16xf32> to vector<8x8xf32>
    %cst_73 = arith.constant dense<0.000000e+00> : vector<8x8xf32>
    %208 = tpu.matmul %207, %189, %cst_73 {dimension_numbers = #tpu.dot_dimension_numbers<[1], [0], [0], [1], [0, 0, 1, 1], [], []>} : vector<8x8xf32>, vector<8x8xf32>, vector<8x8xf32> -> vector<8x8xf32>
    %cst_74 = arith.constant 1.000000e+00 : f32
    %209 = vector.broadcast %cst_74 : f32 to vector<8x8xf32>
    %210 = arith.mulf %206, %209 : vector<8x8xf32>
    %cst_75 = arith.constant -1.000000e+30 : f32
    %211 = vector.broadcast %cst_75 : f32 to vector<8x8xf32>
    %212 = arith.select %33, %210, %211 : vector<8x8xi1>, vector<8x8xf32>
    %cst_76 = arith.constant dense<0xFF800000> : vector<8xf32>
    %213 = vector.multi_reduction <maximumf>, %212, %cst_76 [1] : vector<8x8xf32> to vector<8xf32>
    %214 = vector.shape_cast %213 : vector<8xf32> to vector<8x1xf32>
    %215 = vector.broadcast %214 : vector<8x1xf32> to vector<8x8xf32>
    %216 = arith.subf %212, %215 : vector<8x8xf32>
    %217 = math.exp %216 : vector<8x8xf32>
    %cst_77 = arith.constant 0.000000e+00 : f32
    %218 = vector.broadcast %cst_77 : f32 to vector<8x8xf32>
    %219 = arith.select %33, %217, %218 : vector<8x8xi1>, vector<8x8xf32>
    %cst_78 = arith.constant dense<0.000000e+00> : vector<8xf32>
    %220 = vector.multi_reduction <add>, %219, %cst_78 [1] : vector<8x8xf32> to vector<8xf32>
    %221 = vector.shape_cast %220 : vector<8xf32> to vector<8x1xf32>
    %222 = vector.broadcast %221 : vector<8x1xf32> to vector<8x8xf32>
    %223 = arith.divf %219, %222 : vector<8x8xf32>
    %cst_79 = arith.constant 1.000000e+00 : f32
    %224 = vector.broadcast %cst_79 : f32 to vector<8x8xf32>
    %225 = arith.mulf %208, %224 : vector<8x8xf32>
    %cst_80 = arith.constant -1.000000e+30 : f32
    %226 = vector.broadcast %cst_80 : f32 to vector<8x8xf32>
    %227 = arith.select %33, %225, %226 : vector<8x8xi1>, vector<8x8xf32>
    %cst_81 = arith.constant dense<0xFF800000> : vector<8xf32>
    %228 = vector.multi_reduction <maximumf>, %227, %cst_81 [1] : vector<8x8xf32> to vector<8xf32>
    %229 = vector.shape_cast %228 : vector<8xf32> to vector<8x1xf32>
    %230 = vector.broadcast %229 : vector<8x1xf32> to vector<8x8xf32>
    %231 = arith.subf %227, %230 : vector<8x8xf32>
    %232 = math.exp %231 : vector<8x8xf32>
    %cst_82 = arith.constant 0.000000e+00 : f32
    %233 = vector.broadcast %cst_82 : f32 to vector<8x8xf32>
    %234 = arith.select %33, %232, %233 : vector<8x8xi1>, vector<8x8xf32>
    %cst_83 = arith.constant dense<0.000000e+00> : vector<8xf32>
    %235 = vector.multi_reduction <add>, %234, %cst_83 [1] : vector<8x8xf32> to vector<8xf32>
    %236 = vector.shape_cast %235 : vector<8xf32> to vector<8x1xf32>
    %237 = vector.broadcast %236 : vector<8x1xf32> to vector<8x8xf32>
    %238 = arith.divf %234, %237 : vector<8x8xf32>
    %cst_84 = arith.constant dense<0.000000e+00> : vector<2x8xf32>
    %239 = tpu.matmul %16, %189, %cst_84 {dimension_numbers = #tpu.dot_dimension_numbers<[1], [0], [0], [1], [0, 0, 1, 1], [], []>} : vector<2x8xf32>, vector<8x8xf32>, vector<2x8xf32> -> vector<2x8xf32>
    %cst_85 = arith.constant 1.000000e+00 : f32
    %240 = vector.broadcast %cst_85 : f32 to vector<2x8xf32>
    %241 = arith.mulf %239, %240 : vector<2x8xf32>
    %cst_86 = arith.constant -1.000000e+30 : f32
    %242 = vector.shape_cast %36 : vector<1x8xi1> to vector<1x8xi1>
    %243 = vector.broadcast %242 : vector<1x8xi1> to vector<2x8xi1>
    %244 = vector.broadcast %cst_86 : f32 to vector<2x8xf32>
    %245 = arith.select %243, %241, %244 : vector<2x8xi1>, vector<2x8xf32>
    %cst_87 = arith.constant dense<0xFF800000> : vector<2xf32>
    %246 = vector.multi_reduction <maximumf>, %245, %cst_87 [1] : vector<2x8xf32> to vector<2xf32>
    %247 = vector.shape_cast %246 : vector<2xf32> to vector<2x1xf32>
    %248 = vector.broadcast %247 : vector<2x1xf32> to vector<2x8xf32>
    %249 = arith.subf %245, %248 : vector<2x8xf32>
    %250 = math.exp %249 : vector<2x8xf32>
    %cst_88 = arith.constant 0.000000e+00 : f32
    %251 = vector.shape_cast %36 : vector<1x8xi1> to vector<1x8xi1>
    %252 = vector.broadcast %251 : vector<1x8xi1> to vector<2x8xi1>
    %253 = vector.broadcast %cst_88 : f32 to vector<2x8xf32>
    %254 = arith.select %252, %250, %253 : vector<2x8xi1>, vector<2x8xf32>
    %cst_89 = arith.constant dense<0.000000e+00> : vector<2xf32>
    %255 = vector.multi_reduction <add>, %254, %cst_89 [1] : vector<2x8xf32> to vector<2xf32>
    %256 = vector.shape_cast %255 : vector<2xf32> to vector<2x1xf32>
    %257 = vector.broadcast %256 : vector<2x1xf32> to vector<2x8xf32>
    %258 = arith.divf %254, %257 : vector<2x8xf32>
    %259 = vector.extract_strided_slice %258 {offsets = [0, 0], sizes = [1, 8], strides = [1, 1]} : vector<2x8xf32> to vector<1x8xf32>
    %260 = vector.broadcast %259 : vector<1x8xf32> to vector<8x8xf32>
    %261 = arith.mulf %223, %260 : vector<8x8xf32>
    %cst_90 = arith.constant dense<0.000000e+00> : vector<8xf32>
    %262 = vector.multi_reduction <add>, %261, %cst_90 [1] : vector<8x8xf32> to vector<8xf32>
    %263 = vector.shape_cast %262 : vector<8xf32> to vector<8x1xf32>
    %264 = vector.extract_strided_slice %258 {offsets = [1, 0], sizes = [1, 8], strides = [1, 1]} : vector<2x8xf32> to vector<1x8xf32>
    %265 = vector.broadcast %264 : vector<1x8xf32> to vector<8x8xf32>
    %266 = arith.mulf %238, %265 : vector<8x8xf32>
    %cst_91 = arith.constant dense<0.000000e+00> : vector<8xf32>
    %267 = vector.multi_reduction <add>, %266, %cst_91 [1] : vector<8x8xf32> to vector<8xf32>
    %268 = vector.shape_cast %267 : vector<8xf32> to vector<8x1xf32>
    %269 = tpu.concatenate %263, %268 in 1 : vector<8x1xf32>, vector<8x1xf32> -> vector<8x2xf32>
    %cst_92 = arith.constant 1.000000e+00 : f32
    %270 = vector.broadcast %cst_92 : f32 to vector<8x2xf32>
    %271 = arith.mulf %269, %270 : vector<8x2xf32>
    %cst_93 = arith.constant -1.000000e+30 : f32
    %272 = vector.shape_cast %39 : vector<8x1xi1> to vector<8x1xi1>
    %273 = vector.broadcast %272 : vector<8x1xi1> to vector<8x2xi1>
    %274 = vector.broadcast %cst_93 : f32 to vector<8x2xf32>
    %275 = arith.select %273, %271, %274 : vector<8x2xi1>, vector<8x2xf32>
    %cst_94 = arith.constant dense<0xFF800000> : vector<2xf32>
    %276 = vector.multi_reduction <maximumf>, %275, %cst_94 [0] : vector<8x2xf32> to vector<2xf32>
    %277 = vector.shape_cast %276 : vector<2xf32> to vector<1x2xf32>
    %278 = vector.broadcast %277 : vector<1x2xf32> to vector<8x2xf32>
    %279 = arith.subf %275, %278 : vector<8x2xf32>
    %280 = math.exp %279 : vector<8x2xf32>
    %cst_95 = arith.constant 0.000000e+00 : f32
    %281 = vector.shape_cast %39 : vector<8x1xi1> to vector<8x1xi1>
    %282 = vector.broadcast %281 : vector<8x1xi1> to vector<8x2xi1>
    %283 = vector.broadcast %cst_95 : f32 to vector<8x2xf32>
    %284 = arith.select %282, %280, %283 : vector<8x2xi1>, vector<8x2xf32>
    %cst_96 = arith.constant dense<0.000000e+00> : vector<2xf32>
    %285 = vector.multi_reduction <add>, %284, %cst_96 [0] : vector<8x2xf32> to vector<2xf32>
    %286 = vector.shape_cast %285 : vector<2xf32> to vector<1x2xf32>
    %287 = vector.broadcast %286 : vector<1x2xf32> to vector<8x2xf32>
    %288 = arith.divf %284, %287 : vector<8x2xf32>
    %289 = tpu.transpose %288, [1, 0] : vector<8x2xf32> -> vector<2x8xf32>
    %cst_97 = arith.constant dense<0.000000e+00> : vector<2x16xf32>
    %290 = tpu.matmul %289, %203, %cst_97 {dimension_numbers = #tpu.dot_dimension_numbers<[1], [0], [0], [1], [0, 0, 1, 1], [], []>} : vector<2x8xf32>, vector<8x16xf32>, vector<2x16xf32> -> vector<2x16xf32>
    %cst_98 = arith.constant dense<0.000000e+00> : vector<2x64xf32>
    %291 = tpu.matmul %290, %17, %cst_98 {dimension_numbers = #tpu.dot_dimension_numbers<[1], [0], [0], [1], [0, 0, 1, 1], [], []>} : vector<2x16xf32>, vector<16x64xf32>, vector<2x64xf32> -> vector<2x64xf32>
    %292 = vector.broadcast %18 : vector<1x64xf32> to vector<2x64xf32>
    %293 = arith.addf %291, %292 : vector<2x64xf32>
    %c0_i32_99 = arith.constant 0 : i32
    %294 = vector.broadcast %c0_i32_99 : i32 to vector<2x1xi32>
    %295 = arith.cmpi eq, %40, %294 : vector<2x1xi32>
    %296 = vector.extract_strided_slice %293 {offsets = [0, 0], sizes = [2, 32], strides = [1, 1]} : vector<2x64xf32> to vector<2x32xf32>
    %297 = vector.extract_strided_slice %293 {offsets = [0, 32], sizes = [2, 32], strides = [1, 1]} : vector<2x64xf32> to vector<2x32xf32>
    %298 = vector.shape_cast %295 : vector<2x1xi1> to vector<2x1xi1>
    %299 = vector.broadcast %298 : vector<2x1xi1> to vector<2x32xi1>
    %300 = arith.select %299, %296, %297 : vector<2x32xi1>, vector<2x32xf32>
    %cst_100 = arith.constant 0.000000e+00 : f32
    %301 = vector.broadcast %cst_100 : f32 to vector<2x32xf32>
    %302 = arith.cmpf oge, %300, %301 : vector<2x32xf32>
    %303 = vector.broadcast %45 : vector<2x1xf32> to vector<2x32xf32>
    %304 = arith.mulf %303, %300 : vector<2x32xf32>
    %305 = arith.select %302, %300, %304 : vector<2x32xi1>, vector<2x32xf32>
    %cst_101 = arith.constant dense<0.000000e+00> : vector<2x10xf32>
    %306 = tpu.matmul %305, %19, %cst_101 {dimension_numbers = #tpu.dot_dimension_numbers<[1], [0], [0], [1], [0, 0, 1, 1], [], []>} : vector<2x32xf32>, vector<32x10xf32>, vector<2x10xf32> -> vector<2x10xf32>
    %307 = vector.broadcast %20 : vector<1x10xf32> to vector<2x10xf32>
    %308 = arith.addf %306, %307 : vector<2x10xf32>
    %309 = vector.extract_strided_slice %308 {offsets = [0, 0], sizes = [1, 4], strides = [1, 1]} : vector<2x10xf32> to vector<1x4xf32>
    %310 = vector.extract_strided_slice %308 {offsets = [1, 4], sizes = [1, 6], strides = [1, 1]} : vector<2x10xf32> to vector<1x6xf32>
    %311 = tpu.concatenate %309, %310 in 1 : vector<1x4xf32>, vector<1x6xf32> -> vector<1x10xf32>
    %cst_102 = arith.constant 0.000000e+00 : f32
    %312 = vector.broadcast %cst_102 : f32 to vector<7x10xf32>
    %313 = tpu.concatenate %311, %312 in 0 : vector<1x10xf32>, vector<7x10xf32> -> vector<8x10xf32>
    %cst_103 = arith.constant 0.000000e+00 : f32
    %314 = vector.broadcast %cst_103 : f32 to vector<8x110xf32>
    %315 = tpu.concatenate %188, %313, %314 in 1 : vector<8x8xf32>, vector<8x10xf32>, vector<8x110xf32> -> vector<8x128xf32>
    %316 = vector.shape_cast %315 : vector<8x128xf32> to vector<1x8x128xf32>
    %c0_104 = arith.constant 0 : index
    %c0_105 = arith.constant 0 : index
    %c0_106 = arith.constant 0 : index
    %317 = vector.load %arg5[%c0_104, %c0_105, %c0_106] : memref<1x8x128xf32, #tpu.memory_space<vmem>>, vector<1x8x128xf32>
    tpu.vector_store %arg5[%c0_104, %c0_105, %c0_106], %316 {strides = array<i32>} : memref<1x8x128xf32, #tpu.memory_space<vmem>>, vector<1x8x128xf32>,
    return
  }
  func.func @transform_0(%arg0: i32, %arg1: memref<2xi32, #tpu.memory_space<smem>>, %arg2: memref<2xf32, #tpu.memory_space<smem>>) -> (i32, i32, i32) {
    %c0_i32 = arith.constant 0 : i32
    %c0_i32_0 = arith.constant 0 : i32
    %c0_i32_1 = arith.constant 0 : i32
    return %arg0, %c0_i32, %c0_i32_0 : i32, i32, i32
  }
  func.func @transform_1(%arg0: i32, %arg1: memref<2xi32, #tpu.memory_space<smem>>, %arg2: memref<2xf32, #tpu.memory_space<smem>>) -> (i32, i32) {
    %c0_i32 = arith.constant 0 : i32
    %c0_i32_0 = arith.constant 0 : i32
    %c0_i32_1 = arith.constant 0 : i32
    return %c0_i32, %c0_i32_0 : i32, i32
  }
  func.func @transform_2(%arg0: i32, %arg1: memref<2xi32, #tpu.memory_space<smem>>, %arg2: memref<2xf32, #tpu.memory_space<smem>>) -> (i32, i32, i32) {
    %c0_i32 = arith.constant 0 : i32
    %c0_i32_0 = arith.constant 0 : i32
    %c0_i32_1 = arith.constant 0 : i32
    return %arg0, %c0_i32, %c0_i32_0 : i32, i32, i32
  }
}

</mosaic_0001>

<bundles_post_ra>
// kernel: multitask_kbqa_forward.1
= control target key start
LH: loop header
LB: loop body
LE: loop exit
PB: predicated region body
PF: predicated region fallthrough
CT: control target
= control target key end

     0   :  { %s3659_s0 = inlined_call_operand.vmem [shape: s32[2], index: 0, kind: input, shape index: {}]   ;;  %s3660_s2 = inlined_call_operand.vmem [shape: f32[2,8,32], index: 2, kind: input, shape index: {}]   ;;  %s3661_s3 = inlined_call_operand.vmem [shape: f32[400,128], index: 3, kind: input, shape index: {}]   ;;  %s3662_s4 = inlined_call_operand.vmem [shape: f32[2,8,128], index: 4, kind: output, shape index: {}]   ;;  %s3663_s1 = inlined_call_operand.vmem [shape: f32[2], index: 1, kind: input, shape index: {}]  }
   0x1   :  { %s9_s17 = sshll.u32 %s3659_s0, 4  ;;  %s13_s20 = sshll.u32 %s3663_s1, 4  ;;  %s10_s17 = int_to_ptr.vmem [resolvable:$true] %s9_s17  ;;  %s14_s20 = int_to_ptr.vmem [resolvable:$true] %s13_s20 }
   0x2   :  { %s3003_s21 = scalar_lea.vmem %s10_s17, 16  ;;  %p3008_p1 = scmp.lt.s32.totalorder %s10_s17, %s10_s17 }
   0x3   :  { %p3004_p0 = scmp.ne.s32.totalorder %s10_s17, %s3003_s21  ;;  %p3009_p2 = scmp.lt.s32.totalorder %s3003_s21, %s3003_s21 }
   0x5   :  { %p3010_p3 = por %p3009_p2, %p3008_p1 }
   0x7   :  { %p3011_p4 = pnand %p3010_p3, %p3004_p0 }
   0x9   :  { %3014 = shalt.err (!%p3011_p4)  }
   0xa   :  { %s3037_s22 = smov [#allocation3]   ;;  %s3015_s23 = scalar_lea.vmem %s14_s20, 16 }
   0xb   :  { %12 = dma.vmem_to_smem %s10_s17, 16, %s3037_s22, [#allocation2] }
   0xc   :  { %p3016_p5 = scmp.ne.s32.totalorder %s14_s20, %s3015_s23  ;;  %p3020_p6 = scmp.lt.s32.totalorder %s14_s20, %s14_s20 }
   0xd   :  { %p3021_p7 = scmp.lt.s32.totalorder %s3015_s23, %s3015_s23 }
   0xf   :  { %p3022_p8 = por %p3021_p7, %p3020_p6 }
  0x11   :  { %p3023_p9 = pnand %p3022_p8, %p3016_p5 }
  0x13   :  { %3026 = shalt.err (!%p3023_p9)  }
  0x14   :  { %s3038_s0 = smov [#allocation4]  }
  0x15   :  { %16 = dma.vmem_to_smem %s14_s20, 16, %s3038_s0, [#allocation2] }
  0x16   :  { %3031 = dma.done.wait [#allocation2], 32 }
  0x17   :  { %3032 = vsyncadd [#allocation2], 4294967264 }
  0x18   :  { %18 = sfence }
  0x19   :  { %s3075_s1 = smov 0  }
  0x1a LB: > { %s3081_s24 = sadd.s32 4294967295, %s3035_s1   ;;  %p2576_p10 = scmp.ge.s32.totalorder %s3035_s1, 1  ;;  %s3035_s1 = sphi %s3075_s1, %s24_s1  }
  0x1b   : > { %p123_p11 = scmp.lt.s32.totalorder %s3035_s1, 3 }
  0x1d   : > { %p124_p12 = pnand %p2576_p10, %p123_p11 }
  0x1e   : > { %p143_p13 = scmp.lt.s32.totalorder (!%p124_p12), %s3081_s24, 1  ;;  %s3041_s5 = smov (!%p124_p12), 120  }
  0x1f   : > { %127 = sbr.rel (%p124_p12) target bundleno = 4901 (0x1325), region = 28  ;;  %s151_s9 = sld [smem:[#allocation3 + %s3081_s24]] (!%p124_p12) }
  0x20   : > { %s154_s10 = sld [smem:[#allocation4]] (!%p124_p12) }
  0x24   : > { %v160_v0 = vld [vmem:[%s3661_s3 + $0x18] sm:$0xff]  ;;  %v3039_v1 = vmov 0.0   ;;  %v159_v2 = vld [vmem:[%s3661_s3 + $0x10] sm:$0xff]  ;;  %vm3040_vm0 = vmmov 0   ;;  %s3096_s29 = scalar_select %p143_p13, %s3081_s24, 1  ;;  %v158_v3 = vld [vmem:[%s3661_s3 + $0x8] sm:$0xff]  ;;  %v286_v53 = vlaneseq }
  0x25   : > { %2725 = vmatprep.subr.mxu0 %v3039_v1  ;;  %2733 = vmatprep.mubr.msk.f32.mxu0 %vm3040_vm0, %v3039_v1  ;;  %v157_v4 = vld [vmem:[%s3661_s3] sm:$0xff]  ;;  %vm211_vm1 = vcmask 261120   ;;  %v3126_v6 = vld [vmem:[%s3661_s3 + $0x38] sm:$0xff]  ;;  %v3131_v7 = vld [vmem:[%s3661_s3 + $0x30] sm:$0xff]  ;;  %vm378_vm2 = vcmask 1040384   ;;  %vm382_vm3 = vcmask 1046528  }
  0x26   : > { %2726 = vmatpush3.msra.mxu0 %v160_v0  ;;  %2736 = vmatprep.subr.mxu1 %v3039_v1  ;;  %s2577_s6 = sshll.u32 %s3096_s29, 3  ;;  %v3136_v8 = vld [vmem:[%s3661_s3 + $0x78] sm:$0xff]  ;;  %v3143_v9 = vld [vmem:[%s3661_s3 + $0x70] sm:$0xff]  ;;  %v3150_v10 = vld [vmem:[%s3661_s3 + $0x28] sm:$0xff]  ;;  %vm609_vm4 = vcmask 130048   ;;  %vm683_vm5 = vcmask 64512  }
  0x27   : > { %2727 = vmatprep.subr.mxu0 %v3039_v1  ;;  %2744 = vmatprep.mubr.msk.f32.mxu1 %vm3040_vm0, %v3039_v1  ;;  %s146_s11 = scalar_lea.vmem %s3660_s2, %s2577_s6  ;;  %v3155_v11 = vld [vmem:[%s3661_s3 + $0x68] sm:$0xff]  ;;  %v3164_v12 = vld [vmem:[%s3661_s3 + $0x20] sm:$0xff]  ;;  %v2580_v14 = vld [vmem:[%s3661_s3 + $0x158] ss:$0 sm:$0xff]  ;;  %p152_p0 = scmp.gt.s32.totalorder %s151_s9, 1  ;;  %v287_v54 = vand.u32 127, %v286_v53 }
  0x28   : > { %2728 = vmatpush3.msra.mxu0 %v159_v2  ;;  %v3115_v5 = vld [vmem:[%s146_s11] sm:$0xff]  ;;  %2737 = vmatpush3.msra.mxu1 %v3126_v6  ;;  %v3185_v18 = vld [vmem:[%s3661_s3 + $0x58] sm:$0xff]  ;;  %v3196_v21 = vld [vmem:[%s3661_s3 + $0x50] sm:$0xff]  ;;  %vm936_vm7 = vcmask 58368   ;;  %vm965_vm8 = vcmask 7168   ;;  %vm970_vm10 = vcmask 15360   ;;  %s150_s14 = scalar_lea.vmem %s3662_s4, %s2577_s6 }
  0x29   : > { %2729 = vmatprep.subr.mxu0 %v3039_v1  ;;  %2738 = vmatprep.subr.mxu1 %v3039_v1  ;;  %v3175_v13 = vld [vmem:[%s3661_s3 + $0x60] sm:$0xff]  ;;  %v3201_v22 = vld [vmem:[%s3661_s3 + $0x98] sm:$0xff]  ;;  %v3211_v23 = vld [vmem:[%s3661_s3 + $0x48] sm:$0xff]  ;;  %s3669_s9 = smov (!%p152_p0, %s151_s9), 1  ;;  %s3042_s24 = smov 96   ;;  %vm1409_vm13 = vcmask 1041408  }
  0x2a   : > { %2730 = vmatpush3.msra.mxu0 %v158_v3  ;;  %2739 = vmatpush3.msra.mxu1 %v3131_v7  ;;  %v3216_v24 = vld [vmem:[%s3661_s3 + $0x90] sm:$0xff]  ;;  %v3225_v26 = vld [vmem:[%s3661_s3 + $0x40] sm:$0xff]  ;;  %v3230_v27 = vld [vmem:[%s3661_s3 + $0x88] sm:$0xff]  ;;  %v288_v55 = vstv %s3669_s9  ;;  %s2579_s11 = sld [smem:[#allocation4 + $0x1]]  ;;  %vm1263_vm14 = vcmask 31744   ;;  %vm1405_vm15 = vcmask 80896  }
  0x2b   : > { %2731 = vmatprep.subr.mxu0 %v3039_v1  ;;  %2740 = vmatprep.subr.mxu1 %v3039_v1  ;;  %v3239_v29 = vld [vmem:[%s3661_s3 + $0x80] sm:$0xff]  ;;  %v3260_v32 = vld [vmem:[%s3661_s3 + $0xa8] sm:$0xff]  ;;  %v3307_v52 = vld [vmem:[%s3661_s3 + $0xb0] sm:$0x3]  ;;  %vm3320_vm6 = vcmp.lt.s32.totalorder %v287_v54, %v288_v55 }
  0x2c   : > { %2732 = vmatpush3.msra.mxu0 %v157_v4  ;;  %2741 = vmatpush3.msra.mxu1 %v3150_v10  ;;  %v3267_v33 = vld [vmem:[%s3661_s3 + $0xa0] sm:$0xff]  ;;  %v3274_v41 = vld [vmem:[%s3661_s3 + $0x168] ss:$0 sm:$0xff] }
  0x2d   : > { %2734 = vmatmul.mubr.msk.f32.vlgmr.msra.gmra.mxu0 %vm211_vm1, %v3115_v5  ;;  %2747 = vmatprep.subr.mxu0 %v3039_v1  ;;  %v3279_v45 = vld [vmem:[%s3661_s3 + $0x160] ss:$0 sm:$0xff] }
  0x2e   : > { %2755 = vmatprep.mubr.msk.f32.mxu0 %vm3040_vm0, %v3039_v1  ;;  %2748 = vmatpush3.msra.mxu0 %v3136_v8 }
  0x2f   : > { %2749 = vmatprep.subr.mxu0 %v3039_v1  ;;  %2742 = vmatprep.subr.mxu1 %v3039_v1 }
  0x30   : > { %2750 = vmatpush3.msra.mxu0 %v3143_v9  ;;  %2743 = vmatpush3.msra.mxu1 %v3164_v12 }
  0x31   : > { %2751 = vmatprep.subr.mxu0 %v3039_v1  ;;  %2758 = vmatprep.subr.mxu1 %v3039_v1 }
  0x32   : > { %2752 = vmatpush3.msra.mxu0 %v3155_v11 }
  0x33   : > { %2753 = vmatprep.subr.mxu0 %v3039_v1 }
  0x34   : > { %2754 = vmatpush3.msra.mxu0 %v3175_v13 }
  0x35   : > { %2769 = vmatprep.subr.mxu0 %v3039_v1 }
  0xed   : > { %v281_v15 = vpop.f32.mrf.mxu0 }
  0xee   : > { %v282_v16 = vadd.f32 %v2580_v14, %v281_v15 }
  0xef   : > { %v2735_v17 = vpop.f32.mrf.mxu0 }
  0xf0   : > { %2969 = vtanh.f32 %v282_v16 }
  0xfd   : > { %v3187_v19 = vpop.eup %2969 }
  0xfe   : > { %2745 = vmatmul.mubr.msk.f32.vlgmr.msra.gmra.mxu1 %vm211_vm1, %v3187_v19  ;;  %v374_v20 = vadd.f32 %v3187_v19, %v3115_v5 }
  0xff   : > { %2759 = vmatpush3.msra.mxu1 %v3185_v18  ;;  %2766 = vmatprep.mubr.msk.f32.mxu1 %vm3040_vm0, %v3039_v1 }
 0x100   : > { %2760 = vmatprep.subr.mxu1 %v3039_v1  ;;  %2756 = vmatmul.mubr.msk.f32.vlgmr.msra.gmra.mxu0 %vm211_vm1, %v374_v20  ;;  %v376_v25 = vrot.slane %v374_v20, 7  ;;  %v380_v28 = vrot.slane %v374_v20, 1 }
 0x101   : > { %2761 = vmatpush3.msra.mxu1 %v3196_v21  ;;  %2770 = vmatpush3.msra.mxu0 %v3201_v22 }
 0x102   : > { %2762 = vmatprep.subr.mxu1 %v3039_v1  ;;  %2771 = vmatprep.subr.mxu0 %v3039_v1  ;;  %v379_v30 = vsel %vm378_vm2, 0.0, %v376_v25  ;;  %v383_v31 = vsel %vm382_vm3, %v380_v28, 0.0 }
 0x103   : > { %2763 = vmatpush3.msra.mxu1 %v3211_v23  ;;  %2772 = vmatpush3.msra.mxu0 %v3216_v24 }
 0x104   : > { %2764 = vmatprep.subr.mxu1 %v3039_v1  ;;  %2773 = vmatprep.subr.mxu0 %v3039_v1 }
 0x105   : > { %2765 = vmatpush3.msra.mxu1 %v3225_v26  ;;  %2774 = vmatpush3.msra.mxu0 %v3230_v27 }
 0x106   : > { %2767 = vmatmul.mubr.msk.f32.vlgmr.msra.gmra.mxu1 %vm211_vm1, %v379_v30  ;;  %2775 = vmatprep.subr.mxu0 %v3039_v1 }
 0x107   : > { %2776 = vmatpush3.msra.mxu0 %v3239_v29  ;;  %2777 = vmatprep.mubr.msk.f32.mxu0 %vm3040_vm0, %v3039_v1 }
 0x108   : > { %2778 = vmatmul.mubr.msk.f32.vlgmr.msra.gmra.mxu0 %vm211_vm1, %v383_v31  ;;  %2780 = vmatprep.subr.mxu1 %v3039_v1 }
 0x109   : > { %2784 = vmatprep.mubr.msk.f32.mxu1 %vm3040_vm0, %v3039_v1  ;;  %2802 = vmatprep.subr.mxu0 %v3039_v1 }
 0x10a   : > { %2804 = vmatprep.mubr.msk.f32.mxu0 %vm3040_vm0, %v3039_v1  ;;  %2781 = vmatpush3.msra.mxu1 %v3260_v32 }
 0x10b   : > { %2782 = vmatprep.subr.mxu1 %v3039_v1 }
 0x10c   : > { %2783 = vmatpush3.msra.mxu1 %v3267_v33 }
 0x10d   : > { %2787 = vmatprep.subr.mxu1 %v3039_v1 }
 0x1be   : > { %v370_v34 = vpop.f32.mrf.mxu1 }
 0x1bf   : > { %v3283_v48 = vadd.f32 %v3279_v45, %v370_v34 }
 0x1c0   : > { %v2746_v35 = vpop.f32.mrf.mxu1  ;;  %v452_v36 = vpop.f32.mrf.mxu0 }
 0x1c2   : > { %v2757_v37 = vpop.f32.mrf.mxu0 }
 0x1c6   : > { %v525_v38 = vpop.f32.mrf.mxu1 }
 0x1c7   : > { %v526_v39 = vadd.f32 %v525_v38, %v452_v36 }
 0x1c8   : > { %v2768_v40 = vpop.f32.mrf.mxu1  ;;  %v598_v42 = vpop.f32.mrf.mxu0 }
 0x1c9   : > { %v602_v43 = vadd.f32 %v598_v42, %v526_v39 }
 0x1ca   : > { %v2779_v44 = vpop.f32.mrf.mxu0 }
 0x1cb   : > { %v607_v46 = vadd.f32 %v3274_v41, %v602_v43 }
 0x1cd   : > { %v608_v47 = vmax.f32 %v607_v46, 0.0 }
 0x1cf   : > { %2785 = vmatmul.mubr.msk.f32.vlgmr.msra.gmra.mxu1 %vm609_vm4, %v608_v47  ;;  %2803 = vmatpush3.msra.mxu0 %v608_v47 }
 0x1d0   : > { %2788 = vmatpush3.xpose.msk.msra.mxu1 %vm683_vm5, %v3283_v48  ;;  %2789 = vmatprep.mubr.msk.f32.mxu1 %vm3040_vm0, %v3039_v1 }
 0x1d1   : > { %2792 = vmatprep.subr.mxu1 %v3039_v1  ;;  %2814 = vmatprep.subr.mxu0 %v3039_v1 }
 0x28f   : > { %v679_v49 = vpop.f32.mrf.mxu1 }
 0x290   : > { %760 = vrot.lane.b32.xlu0 %v679_v49, %s3041_s5  ;;  %2790 = vmatmul.mubr.msk.f32.vlgmr.msra.gmra.mxu1 %vm683_vm5, %v679_v49 }
 0x291   : > { %2793 = vmatpush3.xpose.msk.msra.mxu1 %vm683_vm5, %v3283_v48  ;;  %v2786_v50 = vpop.f32.mrf.mxu1  ;;  %2794 = vmatprep.mubr.msk.f32.mxu1 %vm3040_vm0, %v3039_v1 }
 0x292   : > { %2797 = vmatprep.subr.mxu1 %v3039_v1  ;;  %v3342_v50 = vshrl.u32 %v286_v53, 7 }
 0x294   : > { %v3345_v54 = vsub.s32 0, %v3342_v50  ;;  %vm3356_vm9 = vcmp.lt.s32.totalorder %v3342_v50, %v288_v55  ;;  %vm293_vm11 = vcmp.eq.s32.totalorder %v3342_v50, 0 }
 0x302   : > { %v761_v51 = vpop.permute.xlu0 %760 }
 0x303   : > { %2795 = vmatmul.mubr.msk.f32.vlgmr.msra.gmra.mxu1 %vm683_vm5, %v761_v51 }
 0x304   : > { %2798 = vmatpush3.xpose.msk.msra.mxu1 %vm683_vm5, %v3283_v48  ;;  %2799 = vmatprep.mubr.msk.f32.mxu1 %vm3040_vm0, %v3039_v1 }
 0x305   : > { %2807 = vmatprep.subr.mxu1 %v3039_v1 }
 0x307   : > { %2800 = vmatmul.mubr.msk.f32.vlgmr.msra.gmra.mxu1 %vm683_vm5, %v3307_v52 }
 0x308   : > { %2811 = vmatprep.mubr.msk.f32.mxu1 %vm3040_vm0, %v3039_v1 }
 0x350   : > { %v756_v57 = vpop.f32.mrf.mxu1 }
 0x351   : > { %v834_v58 = vsel %vm3320_vm6, %v756_v57, -1e+30 }
 0x352   : > { %v2791_v59 = vpop.f32.mrf.mxu1  ;;  %v835_v60 = vsel %vm683_vm5, %v834_v58, -inf }
 0x353   : > { %836 = vmax.xlane.f32.xlu1 %v835_v60  ;;  %v959_v59 = vsub.s32 1, %v3342_v50 }
 0x3c3   : > { %v830_v61 = vpop.f32.mrf.mxu1 }
 0x3c4   : > { %v847_v62 = vsel %vm3320_vm6, %v830_v61, -1e+30 }
 0x3c5   : > { %v2796_v63 = vpop.f32.mrf.mxu1  ;;  %v848_v0 = vsel %vm683_vm5, %v847_v62, -inf }
 0x3c6   : > { %849 = vmax.xlane.f32.xlu1 %v848_v0 }
 0x3c7   : > { %v929_v2 = vpop.f32.mrf.mxu1 }
 0x3c8   : > { %v935_v3 = vsel %vm3320_vm6, %v929_v2, -1e+30 }
 0x3c9   : > { %v2801_v4 = vpop.f32.mrf.mxu1  ;;  %v937_v14 = vsel %vm936_vm7, %v935_v3, -inf }
 0x3ca   : > { %938 = vmax.xlane.f32.xlu0 %v937_v14 }
 0x3dc   : > { %v837_v15 = vpop.xlane.xlu1 %836 }
 0x3dd   : > { %v838_v16 = vsub.f32 %v834_v58, %v837_v15 }
 0x3df   : > { %v839_v17 = vmul.f32 1.442695, %v838_v16 }
 0x3e1   : > { %2971 = vpow2.f32 %v839_v17 }
 0x3ee   : > { %v2972_v20 = vpop.eup %2971 }
 0x3ef   : > { %v841_v25 = vsel %vm3320_vm6, %v2972_v20, 0.0 }
 0x3f0   : > { %v842_v28 = vsel %vm683_vm5, %v841_v25, 0.0 }
 0x3f1   : > { %843 = vadd.xlane.f32.xlu1 %v842_v28 }
 0x44f   : > { %v850_v30 = vpop.xlane.xlu1 %849 }
 0x450   : > { %v851_v31 = vsub.f32 %v847_v62, %v850_v30 }
 0x452   : > { %v852_v34 = vmul.f32 1.442695, %v851_v31 }
 0x453   : > { %v939_v35 = vpop.xlane.xlu0 %938 }
 0x454   : > { %v940_v36 = vsub.f32 %v935_v3, %v939_v35  ;;  %2973 = vpow2.f32 %v852_v34 }
 0x456   : > { %v941_v37 = vmul.f32 1.442695, %v940_v36 }
 0x458   : > { %2975 = vpow2.f32 %v941_v37 }
 0x461   : > { %v2974_v38 = vpop.eup %2973 }
 0x462   : > { %v854_v43 = vsel %vm3320_vm6, %v2974_v38, 0.0 }
 0x463   : > { %v855_v44 = vsel %vm683_vm5, %v854_v43, 0.0 }
 0x465   : > { %v2976_v39 = vpop.eup %2975 }
 0x466   : > { %v943_v40 = vsel %vm3320_vm6, %v2976_v39, 0.0 }
 0x467   : > { %v944_v42 = vsel %vm936_vm7, %v943_v40, 0.0 }
 0x468   : > { %945 = vadd.xlane.f32.xlu1 %v944_v42 }
 0x46c   : > { %856 = vadd.xlane.f32.xlu1 %v855_v44 }
 0x47a   : > { %v844_v46 = vpop.xlane.xlu1 %843 }
 0x47b   : > { %2977 = vrcp.f32 %v844_v46 }
 0x488   : > { %v2978_v51 = vpop.eup %2977 }
 0x489   : > { %v846_v60 = vmul.f32 %v2978_v51, %v841_v25 }
 0x4f1   : > { %v946_v47 = vpop.xlane.xlu1 %945 }
 0x4f2   : > { %2979 = vrcp.f32 %v946_v47 }
 0x4f5   : > { %v857_v49 = vpop.xlane.xlu1 %856 }
 0x4f6   : > { %2981 = vrcp.f32 %v857_v49 }
 0x4ff   : > { %v2980_v57 = vpop.eup %2979 }
 0x500   : > { %v948_v58 = vmul.f32 %v2980_v57, %v943_v40  ;;  %v3370_v57 = vld [vmem:[%s3661_s3 + $0xc0] sm:$0xff] }
 0x501   : > { %2808 = vmatpush3.msra.mxu1 %v3370_v57 }
 0x502   : > { %v952_v61 = vrot.slane %v948_v58, %v3345_v54  ;;  %v960_v2 = vrot.slane %v948_v58, %v959_v59  ;;  %v3375_v58 = vld [vmem:[%s3661_s3 + $0xb8] sm:$0xff]  ;;  %2809 = vmatprep.subr.mxu1 %v3039_v1 }
 0x503   : > { %v2982_v62 = vpop.eup %2981  ;;  %2810 = vmatpush3.msra.mxu1 %v3375_v58 }
 0x504   : > { %v953_v63 = vmul.f32 %v952_v61, %v846_v60  ;;  %v859_v0 = vmul.f32 %v2982_v62, %v854_v43  ;;  %2825 = vmatprep.subr.mxu1 %v3039_v1  ;;  %v195_v62 = vld [vmem:[%s3661_s3 + $0x108] sm:$0xff] }
 0x506   : > { %v954_v53 = vsel %vm683_vm5, %v953_v63, 0.0  ;;  %v961_v3 = vmul.f32 %v960_v2, %v859_v0  ;;  %v194_v2 = vld [vmem:[%s3661_s3 + $0x100] sm:$0xff] }
 0x507   : > { %955 = vadd.xlane.f32.xlu1 %v954_v53  ;;  %v193_v53 = vld [vmem:[%s3661_s3 + $0xf8] sm:$0xff] }
 0x508   : > { %v962_v4 = vsel %vm683_vm5, %v961_v3, 0.0  ;;  %v192_v3 = vld [vmem:[%s3661_s3 + $0xf0] sm:$0xff] }
 0x50b   : > { %963 = vadd.xlane.f32.xlu1 %v962_v4 }
 0x590   : > { %v956_v14 = vpop.xlane.xlu1 %955 }
 0x594   : > { %v964_v16 = vpop.xlane.xlu1 %963 }
 0x595   : > { %v966_v17 = vsel %vm965_vm8, %v956_v14, %v964_v16 }
 0x596   : > { %v969_v20 = vsel %vm3356_vm9, %v966_v17, -1e+30 }
 0x597   : > { %v971_v25 = vsel %vm970_vm10, %v969_v20, -inf }
 0x598   : > { %v972_v28 = vrot.slane %v971_v25, 4 }
 0x59a   : > { %v973_v30 = vmax.f32 %v971_v25, %v972_v28 }
 0x59c   : > { %v974_v31 = vrot.slane %v973_v30, 2 }
 0x59e   : > { %v975_v34 = vmax.f32 %v973_v30, %v974_v31  ;;  %v294_v31 = vstv %s154_s10 }
 0x5a0   : > { %v976_v35 = vrot.slane %v975_v34, 1 }
 0x5a2   : > { %v977_v36 = vmax.f32 %v975_v34, %v976_v35  ;;  %v295_v34 = vstv %s2579_s11 }
 0x5a3   : > { %v3461_v35 = vsel %vm293_vm11, %v294_v31, %v295_v34 }
 0x5a4   : > { %v978_v37 = vsub.f32 %v969_v20, %v977_v36 }
 0x5a6   : > { %v979_v55 = vmul.f32 1.442695, %v978_v37 }
 0x5a8   : > { %2983 = vpow2.f32 %v979_v55 }
 0x5b5   : > { %v2984_v38 = vpop.eup %2983 }
 0x5b6   : > { %v981_v39 = vsel %vm3356_vm9, %v2984_v38, 0.0 }
 0x5b7   : > { %v982_v40 = vsel %vm970_vm10, %v981_v39, 0.0 }
 0x5b8   : > { %v983_v42 = vrot.slane %v982_v40, 4 }
 0x5ba   : > { %v984_v43 = vadd.f32 %v983_v42, %v982_v40  ;;  %v196_v40 = vld [vmem:[%s3661_s3 + $0x110] sm:$0xff]  ;;  %v3481_v42 = vld [vmem:[%s3661_s3 + $0x178] ss:$0 sm:$0xff] }
 0x5bc   : > { %v985_v44 = vrot.slane %v984_v43, 2 }
 0x5be   : > { %v986_v46 = vadd.f32 %v985_v44, %v984_v43 }
 0x5c0   : > { %v987_v47 = vrot.slane %v986_v46, 1 }
 0x5c2   : > { %v988_v49 = vadd.f32 %v987_v47, %v986_v46 }
 0x5c4   : > { %2985 = vrcp.f32 %v988_v49  ;;  %v204_v49 = vld [vmem:[%s3661_s3 + $0x150] sm:$0x3] }
 0x5d1   : > { %v2986_v51 = vpop.eup %2985 }
 0x5d2   : > { %v990_v60 = vmul.f32 %v2986_v51, %v981_v39  ;;  %v197_v39 = vld [vmem:[%s3661_s3 + $0x118] sm:$0x3] }
 0x5d4   : > { %991 = vxpose.xlu1.b32.start.end [1/1] (short) (narrow) %v990_v60, 8  ;;  %v203_v60 = vld [vmem:[%s3661_s3 + $0x148] sm:$0xff] }
 0x650   : > { %v1007_v61 = vpop.trf.xlu1 }
 0x651   : > { %2805 = vmatmul.mubr.msk.f32.vlgmr.msra.gmra.mxu0 %vm683_vm5, %v1007_v61  ;;  %v202_v61 = vld [vmem:[%s3661_s3 + $0x140] sm:$0xff] }
 0x652   : > { %2822 = vmatprep.mubr.msk.f32.mxu0 %vm3040_vm0, %v3039_v1 }
 0x711   : > { %v1092_v63 = vpop.f32.mrf.mxu0 }
 0x712   : > { %2812 = vmatmul.mubr.msk.f32.vlgmr.msra.gmra.mxu1 %vm609_vm4, %v1092_v63  ;;  %v200_v63 = vld [vmem:[%s3661_s3 + $0x130] sm:$0xff] }
 0x713   : > { %v2806_v0 = vpop.f32.mrf.mxu0  ;;  %2826 = vmatpush3.msra.mxu1 %v195_v62  ;;  %2827 = vmatprep.mubr.msk.f32.mxu1 %vm3040_vm0, %v3039_v1  ;;  %v201_v62 = vld [vmem:[%s3661_s3 + $0x138] sm:$0xff] }
 0x714   : > { %2830 = vmatprep.subr.mxu1 %v3039_v1  ;;  %v199_v0 = vld [vmem:[%s3661_s3 + $0x128] sm:$0xff] }
 0x716   : > { %2828 = vmatmul.mubr.msk.f32.vlgmr.msra.gmra.mxu1 %vm683_vm5, %v3283_v48  ;;  %v191_v48 = vld [vmem:[%s3661_s3 + $0xe8] sm:$0xff] }
 0x717   : > { %2831 = vmatpush3.msra.mxu1 %v194_v2  ;;  %2838 = vmatprep.mubr.msk.f32.mxu1 %vm3040_vm0, %v3039_v1  ;;  %v198_v2 = vld [vmem:[%s3661_s3 + $0x120] sm:$0xff] }
 0x718   : > { %2832 = vmatprep.subr.mxu1 %v3039_v1 }
 0x719   : > { %2833 = vmatpush3.msra.mxu1 %v193_v53 }
 0x71a   : > { %2834 = vmatprep.subr.mxu1 %v3039_v1 }
 0x71b   : > { %2835 = vmatpush3.msra.mxu1 %v192_v3 }
 0x71c   : > { %2836 = vmatprep.subr.mxu1 %v3039_v1 }
 0x71d   : > { %2837 = vmatpush3.msra.mxu1 %v191_v48  ;;  %v2604_v48 = vld [vmem:[%s3661_s3 + $0x180] ss:$0 sm:$0xff] }
 0x71e   : > { %2839 = vmatmul.mubr.msk.f32.vlgmr.msra.gmra.mxu1 %vm211_vm1, %v3187_v19  ;;  %2865 = vmatprep.subr.mxu1 %v3039_v1  ;;  %v3431_v19 = vld [vmem:[%s3661_s3 + $0xd8] sm:$0xff] }
 0x71f   : > { %2866 = vmatpush3.msra.mxu1 %v3126_v6  ;;  %2873 = vmatprep.mubr.msk.f32.mxu1 %vm3040_vm0, %v3039_v1  ;;  %v3426_v6 = vld [vmem:[%s3661_s3 + $0xe0] sm:$0xff] }
 0x720   : > { %2867 = vmatprep.subr.mxu1 %v3039_v1  ;;  %2815 = vmatpush3.msra.mxu0 %v3426_v6 }
 0x721   : > { %2868 = vmatpush3.msra.mxu1 %v3131_v7  ;;  %2816 = vmatprep.subr.mxu0 %v3039_v1  ;;  %v3440_v7 = vld [vmem:[%s3661_s3 + $0xd0] sm:$0xff] }
 0x722   : > { %2869 = vmatprep.subr.mxu1 %v3039_v1  ;;  %2817 = vmatpush3.msra.mxu0 %v3431_v19 }
 0x723   : > { %2870 = vmatpush3.msra.mxu1 %v3150_v10  ;;  %2818 = vmatprep.subr.mxu0 %v3039_v1  ;;  %v3447_v10 = vld [vmem:[%s3661_s3 + $0xc8] sm:$0xff] }
 0x724   : > { %2871 = vmatprep.subr.mxu1 %v3039_v1  ;;  %2819 = vmatpush3.msra.mxu0 %v3440_v7 }
 0x725   : > { %2872 = vmatpush3.msra.mxu1 %v3164_v12  ;;  %2820 = vmatprep.subr.mxu0 %v3039_v1  ;;  %v3454_v12 = vld [vmem:[%s3661_s3 + $0x170] ss:$0 sm:$0xff] }
 0x726   : > { %2876 = vmatprep.subr.mxu1 %v3039_v1  ;;  %2821 = vmatpush3.msra.mxu0 %v3447_v10 }
 0x727   : > { %2841 = vmatprep.subr.mxu0 %v3039_v1 }
 0x7d2   : > { %v1169_v4 = vpop.f32.mrf.mxu1 }
 0x7d3   : > { %v1170_v14 = vadd.f32 %v3454_v12, %v1169_v4 }
 0x7d4   : > { %v2813_v16 = vpop.f32.mrf.mxu1 }
 0x7d5   : > { %1176 = vrot.lane.b32.xlu0 %v1170_v14, %s3042_s24 }
 0x7d6   : > { %v1331_v17 = vpop.f32.mrf.mxu1 }
 0x7d8   : > { %v2829_v20 = vpop.f32.mrf.mxu1 }
 0x7de   : > { %v1401_v25 = vpop.f32.mrf.mxu1 }
 0x7df   : > { %v1402_v28 = vadd.f32 %v1401_v25, %v1331_v17 }
 0x7e0   : > { %v2840_v30 = vpop.f32.mrf.mxu1 }
 0x847   : > { %v1177_v36 = vpop.permute.xlu0 %1176 }
 0x848   : > { %v1179_v37 = vsel %vm293_vm11, %v1170_v14, %v1177_v36 }
 0x849   : > { %vm1180_vm12 = vcmp.ge.f32.partialorder %v1179_v37, 0.0  ;;  %v1181_v55 = vmul.f32 %v1179_v37, %v3461_v35 }
 0x84b   : > { %v1182_v38 = vsel %vm1180_vm12, %v1179_v37, %v1181_v55  ;;  %vm1498_vm12 = vcmask 408576  }
 0x84c   : > { %2823 = vmatmul.mubr.msk.f32.vlgmr.msra.gmra.mxu0 %vm211_vm1, %v1182_v38 }
 0x84d   : > { %2845 = vmatprep.mubr.msk.f32.mxu0 %vm3040_vm0, %v3039_v1  ;;  %2842 = vmatpush3.msk.msra.mxu0 %vm1409_vm13, %v197_v39 }
 0x84e   : > { %2843 = vmatprep.subr.mxu0 %v3039_v1 }
 0x84f   : > { %2844 = vmatpush3.msra.mxu0 %v196_v40 }
 0x850   : > { %2848 = vmatprep.subr.mxu0 %v3039_v1 }
 0x90c   : > { %v1256_v43 = vpop.f32.mrf.mxu0 }
 0x90d   : > { %v1257_v44 = vadd.f32 %v3481_v42, %v1256_v43 }
 0x90e   : > { %v2824_v46 = vpop.f32.mrf.mxu0 }
 0x90f   : > { %v1261_v47 = vrot.slane %v1257_v44, 1 }
 0x911   : > { %v1264_v51 = vsel %vm1263_vm14, %v1257_v44, %v1261_v47 }
 0x912   : > { %2846 = vmatmul.mubr.msk.f32.vlgmr.msra.gmra.mxu0 %vm1405_vm15, %v1264_v51 }
 0x913   : > { %2849 = vmatpush3.msk.msra.mxu0 %vm1409_vm13, %v204_v49  ;;  %2862 = vmatprep.mubr.msk.f32.mxu0 %vm3040_vm0, %v3039_v1 }
 0x914   : > { %2850 = vmatprep.subr.mxu0 %v3039_v1 }
 0x915   : > { %2851 = vmatpush3.msra.mxu0 %v203_v60 }
 0x916   : > { %2852 = vmatprep.subr.mxu0 %v3039_v1 }
 0x917   : > { %2853 = vmatpush3.msra.mxu0 %v202_v61 }
 0x918   : > { %2854 = vmatprep.subr.mxu0 %v3039_v1 }
 0x919   : > { %2855 = vmatpush3.msra.mxu0 %v201_v62 }
 0x91a   : > { %2856 = vmatprep.subr.mxu0 %v3039_v1 }
 0x91b   : > { %2857 = vmatpush3.msra.mxu0 %v200_v63 }
 0x91c   : > { %2858 = vmatprep.subr.mxu0 %v3039_v1 }
 0x91d   : > { %2859 = vmatpush3.msra.mxu0 %v199_v0 }
 0x91e   : > { %2860 = vmatprep.subr.mxu0 %v3039_v1 }
 0x91f   : > { %2861 = vmatpush3.msra.mxu0 %v198_v2 }
 0x920   : > { %2887 = vmatprep.subr.mxu0 %v3039_v1 }
 0x9d2   : > { %v1479_v53 = vpop.f32.mrf.mxu0 }
 0x9d3   : > { %v1486_v3 = vrot.slane %v1479_v53, %v3345_v54 }
 0x9d4   : > { %v2847_v4 = vpop.f32.mrf.mxu0 }
 0x9d5   : > { %v1487_v14 = vadd.f32 %v1486_v3, %v1402_v28 }
 0x9d7   : > { %v1492_v16 = vadd.f32 %v2604_v48, %v1487_v14 }
 0x9d9   : > { %v1493_v17 = vmax.f32 %v1492_v16, 0.0 }
 0x9db   : > { %2863 = vmatmul.mubr.msk.f32.vlgmr.msra.gmra.mxu0 %vm1498_vm12, %v1493_v17 }
 0x9dc   : > { %2888 = vmatpush3.msra.mxu0 %v3185_v18  ;;  %2895 = vmatprep.mubr.msk.f32.mxu0 %vm3040_vm0, %v3039_v1  ;;  %v2605_v18 = vld [vmem:[%s3661_s3 + $0x188] ss:$0 sm:$0xff] }
 0x9dd   : > { %2889 = vmatprep.subr.mxu0 %v3039_v1 }
 0x9de   : > { %2890 = vmatpush3.msra.mxu0 %v3196_v21 }
 0x9df   : > { %2891 = vmatprep.subr.mxu0 %v3039_v1 }
 0x9e0   : > { %2892 = vmatpush3.msra.mxu0 %v3211_v23 }
 0x9e1   : > { %2893 = vmatprep.subr.mxu0 %v3039_v1 }
 0x9e2   : > { %2894 = vmatpush3.msra.mxu0 %v3225_v26 }
 0x9e3   : > { %2909 = vmatprep.subr.mxu0 %v3039_v1 }
 0xa9b   : > { %v1571_v20 = vpop.f32.mrf.mxu0 }
 0xa9c   : > { %v1572_v25 = vadd.f32 %v2605_v18, %v1571_v20 }
 0xa9d   : > { %v2864_v28 = vpop.f32.mrf.mxu0 }
 0xa9e   : > { %v1648_v30 = vadd.f32 %v1572_v25, %v3115_v5  ;;  %2874 = vmatmul.mubr.msk.f32.vlgmr.msra.gmra.mxu1 %vm211_vm1, %v1572_v25 }
 0xa9f   : > { %2877 = vmatpush3.msra.mxu1 %v3136_v8  ;;  %2884 = vmatprep.mubr.msk.f32.mxu1 %vm3040_vm0, %v3039_v1 }
 0xaa0   : > { %v1650_v21 = vrot.slane %v1648_v30, 7  ;;  %2878 = vmatprep.subr.mxu1 %v3039_v1  ;;  %v1653_v5 = vrot.slane %v1648_v30, 1 }
 0xaa1   : > { %2879 = vmatpush3.msra.mxu1 %v3143_v9 }
 0xaa2   : > { %2880 = vmatprep.subr.mxu1 %v3039_v1  ;;  %v1652_v23 = vsel %vm378_vm2, 0.0, %v1650_v21  ;;  %v1655_v8 = vsel %vm382_vm3, %v1653_v5, 0.0  ;;  %vm2516_vm3 = vcmask 146432  }
 0xaa3   : > { %2881 = vmatpush3.msra.mxu1 %v3155_v11  ;;  %2896 = vmatmul.mubr.msk.f32.vlgmr.msra.gmra.mxu0 %vm211_vm1, %v1652_v23 }
 0xaa4   : > { %2882 = vmatprep.subr.mxu1 %v3039_v1  ;;  %2910 = vmatpush3.msra.mxu0 %v3260_v32 }
 0xaa5   : > { %2883 = vmatpush3.msra.mxu1 %v3175_v13  ;;  %2911 = vmatprep.subr.mxu0 %v3039_v1 }
 0xaa6   : > { %2885 = vmatmul.mubr.msk.f32.vlgmr.msra.gmra.mxu1 %vm211_vm1, %v1648_v30  ;;  %2898 = vmatprep.subr.mxu1 %v3039_v1 }
 0xaa7   : > { %2899 = vmatpush3.msra.mxu1 %v3201_v22  ;;  %2906 = vmatprep.mubr.msk.f32.mxu1 %vm3040_vm0, %v3039_v1 }
 0xaa8   : > { %2900 = vmatprep.subr.mxu1 %v3039_v1  ;;  %2912 = vmatpush3.msra.mxu0 %v3267_v33 }
 0xaa9   : > { %2901 = vmatpush3.msra.mxu1 %v3216_v24  ;;  %2913 = vmatprep.mubr.msk.f32.mxu0 %vm3040_vm0, %v3039_v1 }
 0xaaa   : > { %2902 = vmatprep.subr.mxu1 %v3039_v1  ;;  %2921 = vmatprep.subr.mxu0 %v3039_v1 }
 0xaab   : > { %2903 = vmatpush3.msra.mxu1 %v3230_v27 }
 0xaac   : > { %2904 = vmatprep.subr.mxu1 %v3039_v1 }
 0xaad   : > { %2905 = vmatpush3.msra.mxu1 %v3239_v29 }
 0xaae   : > { %2907 = vmatmul.mubr.msk.f32.vlgmr.msra.gmra.mxu1 %vm211_vm1, %v1655_v8  ;;  %2916 = vmatprep.subr.mxu1 %v3039_v1 }
 0xaaf   : > { %2918 = vmatprep.mubr.msk.f32.mxu1 %vm3040_vm0, %v3039_v1 }
 0xb5e   : > { %v1644_v9 = vpop.f32.mrf.mxu1 }
 0xb5f   : > { %v3569_v11 = vadd.f32 %v3279_v45, %v1644_v9 }
 0xb60   : > { %v2875_v13 = vpop.f32.mrf.mxu1 }
 0xb61   : > { %2917 = vmatpush3.xpose.msk.msra.mxu1 %vm683_vm5, %v3569_v11 }
 0xb62   : > { %2926 = vmatprep.subr.mxu1 %v3039_v1 }
 0xb63   : > { %v1797_v22 = vpop.f32.mrf.mxu0 }
 0xb65   : > { %v2897_v24 = vpop.f32.mrf.mxu0 }
 0xb66   : > { %v1724_v26 = vpop.f32.mrf.mxu1 }
 0xb67   : > { %v1798_v29 = vadd.f32 %v1797_v22, %v1724_v26 }
 0xb68   : > { %v2886_v27 = vpop.f32.mrf.mxu1 }
 0xb6e   : > { %v1870_v32 = vpop.f32.mrf.mxu1 }
 0xb6f   : > { %v1874_v33 = vadd.f32 %v1870_v32, %v1798_v29 }
 0xb70   : > { %v2908_v31 = vpop.f32.mrf.mxu1 }
 0xb71   : > { %v1875_v34 = vadd.f32 %v3274_v41, %v1874_v33 }
 0xb73   : > { %v1876_v36 = vmax.f32 %v1875_v34, 0.0 }
 0xb75   : > { %2914 = vmatmul.mubr.msk.f32.vlgmr.msra.gmra.mxu0 %vm609_vm4, %v1876_v36 }
 0xb76   : > { %2922 = vmatpush3.xpose.msk.msra.mxu0 %vm683_vm5, %v3569_v11  ;;  %2923 = vmatprep.mubr.msk.f32.mxu0 %vm3040_vm0, %v3039_v1 }
 0xb77   : > { %2931 = vmatprep.subr.mxu0 %v3039_v1 }
 0xc35   : > { %v1946_v45 = vpop.f32.mrf.mxu0 }
 0xc36   : > { %2026 = vrot.lane.b32.xlu0 %v1946_v45, %s3041_s5  ;;  %2919 = vmatmul.mubr.msk.f32.vlgmr.msra.gmra.mxu1 %vm683_vm5, %v1946_v45  ;;  %s3043_s5 = smov 8  }
 0xc37   : > { %2927 = vmatpush3.xpose.msk.msra.mxu1 %vm683_vm5, %v3569_v11  ;;  %v2915_v41 = vpop.f32.mrf.mxu0  ;;  %2928 = vmatprep.mubr.msk.f32.mxu1 %vm3040_vm0, %v3039_v1 }
 0xc38   : > { %2936 = vmatprep.subr.mxu1 %v3039_v1 }
 0xc3a   : > { %2929 = vmatmul.mubr.msk.f32.vlgmr.msra.gmra.mxu1 %vm683_vm5, %v3307_v52 }
 0xc3b   : > { %2937 = vmatpush3.msra.mxu1 %v3370_v57  ;;  %2940 = vmatprep.mubr.msk.f32.mxu1 %vm3040_vm0, %v3039_v1 }
 0xc3c   : > { %2938 = vmatprep.subr.mxu1 %v3039_v1 }
 0xc3d   : > { %2939 = vmatpush3.msra.mxu1 %v3375_v58 }
 0xca8   : > { %v2027_v37 = vpop.permute.xlu0 %2026 }
 0xca9   : > { %2924 = vmatmul.mubr.msk.f32.vlgmr.msra.gmra.mxu0 %vm683_vm5, %v2027_v37 }
 0xcaa   : > { %2932 = vmatpush3.msra.mxu0 %v1876_v36  ;;  %2933 = vmatprep.mubr.msk.f32.mxu0 %vm3040_vm0, %v3039_v1 }
 0xcab   : > { %2943 = vmatprep.subr.mxu0 %v3039_v1 }
 0xcf6   : > { %v2022_v55 = vpop.f32.mrf.mxu1 }
 0xcf7   : > { %v2100_v52 = vsel %vm3320_vm6, %v2022_v55, -1e+30 }
 0xcf8   : > { %v2920_v57 = vpop.f32.mrf.mxu1  ;;  %v2101_v38 = vsel %vm683_vm5, %v2100_v52, -inf }
 0xcf9   : > { %2102 = vmax.xlane.f32.xlu1 %v2101_v38 }
 0xcfa   : > { %v2192_v39 = vpop.f32.mrf.mxu1 }
 0xcfb   : > { %v2196_v58 = vsel %vm3320_vm6, %v2192_v39, -1e+30 }
 0xcfc   : > { %v2197_v40 = vsel %vm936_vm7, %v2196_v58, -inf  ;;  %v2930_v43 = vpop.f32.mrf.mxu1 }
 0xcfd   : > { %2198 = vmax.xlane.f32.xlu0 %v2197_v40 }
 0xd69   : > { %v2096_v44 = vpop.f32.mrf.mxu0 }
 0xd6a   : > { %v2113_v46 = vsel %vm3320_vm6, %v2096_v44, -1e+30 }
 0xd6b   : > { %v2925_v47 = vpop.f32.mrf.mxu0  ;;  %v2114_v49 = vsel %vm683_vm5, %v2113_v46, -inf }
 0xd6c   : > { %2115 = vmax.xlane.f32.xlu0 %v2114_v49 }
 0xd82   : > { %v2103_v51 = vpop.xlane.xlu1 %2102 }
 0xd83   : > { %v2104_v60 = vsub.f32 %v2100_v52, %v2103_v51 }
 0xd85   : > { %v2105_v61 = vmul.f32 1.442695, %v2104_v60 }
 0xd86   : > { %v2199_v62 = vpop.xlane.xlu0 %2198 }
 0xd87   : > { %2987 = vpow2.f32 %v2105_v61  ;;  %v2200_v63 = vsub.f32 %v2196_v58, %v2199_v62 }
 0xd89   : > { %v2201_v0 = vmul.f32 1.442695, %v2200_v63 }
 0xd8b   : > { %2989 = vpow2.f32 %v2201_v0 }
 0xd94   : > { %v2988_v2 = vpop.eup %2987 }
 0xd95   : > { %v2107_v53 = vsel %vm3320_vm6, %v2988_v2, 0.0 }
 0xd96   : > { %v2108_v3 = vsel %vm683_vm5, %v2107_v53, 0.0 }
 0xd97   : > { %2109 = vadd.xlane.f32.xlu0 %v2108_v3 }
 0xd98   : > { %v2990_v48 = vpop.eup %2989 }
 0xd99   : > { %v2203_v4 = vsel %vm3320_vm6, %v2990_v48, 0.0 }
 0xd9a   : > { %v2204_v14 = vsel %vm936_vm7, %v2203_v4, 0.0 }
 0xd9b   : > { %2205 = vadd.xlane.f32.xlu0 %v2204_v14 }
 0xdf5   : > { %v2116_v16 = vpop.xlane.xlu0 %2115 }
 0xdf6   : > { %v2117_v17 = vsub.f32 %v2113_v46, %v2116_v16 }
 0xdf8   : > { %v2118_v18 = vmul.f32 1.442695, %v2117_v17 }
 0xdfa   : > { %2991 = vpow2.f32 %v2118_v18 }
 0xe07   : > { %v2992_v20 = vpop.eup %2991 }
 0xe08   : > { %v2120_v25 = vsel %vm3320_vm6, %v2992_v20, 0.0 }
 0xe09   : > { %v2121_v28 = vsel %vm683_vm5, %v2120_v25, 0.0 }
 0xe0a   : > { %2122 = vadd.xlane.f32.xlu0 %v2121_v28 }
 0xe20   : > { %v2110_v30 = vpop.xlane.xlu0 %2109 }
 0xe21   : > { %2993 = vrcp.f32 %v2110_v30 }
 0xe24   : > { %v2206_v21 = vpop.xlane.xlu0 %2205 }
 0xe25   : > { %2995 = vrcp.f32 %v2206_v21 }
 0xe2e   : > { %v2994_v23 = vpop.eup %2993 }
 0xe2f   : > { %v2112_v9 = vmul.f32 %v2994_v23, %v2107_v53 }
 0xe32   : > { %v2996_v5 = vpop.eup %2995 }
 0xe33   : > { %v2208_v8 = vmul.f32 %v2996_v5, %v2203_v4 }
 0xe35   : > { %v2212_v13 = vrot.slane %v2208_v8, %v3345_v54  ;;  %v2220_v29 = vrot.slane %v2208_v8, %v959_v59 }
 0xe37   : > { %v2213_v22 = vmul.f32 %v2212_v13, %v2112_v9 }
 0xe39   : > { %v2214_v24 = vsel %vm683_vm5, %v2213_v22, 0.0 }
 0xe3a   : > { %2215 = vadd.xlane.f32.xlu0 %v2214_v24 }
 0xe93   : > { %v2123_v26 = vpop.xlane.xlu0 %2122 }
 0xe94   : > { %2997 = vrcp.f32 %v2123_v26 }
 0xea1   : > { %v2998_v56 = vpop.eup %2997 }
 0xea2   : > { %v2125_v27 = vmul.f32 %v2998_v56, %v2120_v25 }
 0xea4   : > { %v2221_v32 = vmul.f32 %v2220_v29, %v2125_v27 }
 0xea6   : > { %v2222_v33 = vsel %vm683_vm5, %v2221_v32, 0.0 }
 0xea7   : > { %2223 = vadd.xlane.f32.xlu0 %v2222_v33 }
 0xec3   : > { %v2216_v31 = vpop.xlane.xlu0 %2215 }
 0xf30   : > { %v2224_v34 = vpop.xlane.xlu0 %2223 }
 0xf31   : > { %v2225_v36 = vsel %vm965_vm8, %v2216_v31, %v2224_v34 }
 0xf32   : > { %v2226_v54 = vsel %vm3356_vm9, %v2225_v36, -1e+30 }
 0xf33   : > { %v2227_v45 = vsel %vm970_vm10, %v2226_v54, -inf }
 0xf34   : > { %v2228_v41 = vrot.slane %v2227_v45, 4 }
 0xf36   : > { %v2229_v37 = vmax.f32 %v2227_v45, %v2228_v41 }
 0xf38   : > { %v2230_v55 = vrot.slane %v2229_v37, 2 }
 0xf3a   : > { %v2231_v52 = vmax.f32 %v2229_v37, %v2230_v55 }
 0xf3c   : > { %v2232_v57 = vrot.slane %v2231_v52, 1 }
 0xf3e   : > { %v2233_v38 = vmax.f32 %v2231_v52, %v2232_v57 }
 0xf40   : > { %v2234_v59 = vsub.f32 %v2226_v54, %v2233_v38 }
 0xf42   : > { %v2235_v39 = vmul.f32 1.442695, %v2234_v59 }
 0xf44   : > { %2999 = vpow2.f32 %v2235_v39 }
 0xf51   : > { %v3000_v58 = vpop.eup %2999 }
 0xf52   : > { %v2237_v40 = vsel %vm3356_vm9, %v3000_v58, 0.0 }
 0xf53   : > { %v2238_v43 = vsel %vm970_vm10, %v2237_v40, 0.0 }
 0xf54   : > { %v2239_v44 = vrot.slane %v2238_v43, 4 }
 0xf56   : > { %v2240_v46 = vadd.f32 %v2239_v44, %v2238_v43 }
 0xf58   : > { %v2241_v47 = vrot.slane %v2240_v46, 2 }
 0xf5a   : > { %v2242_v49 = vadd.f32 %v2241_v47, %v2240_v46 }
 0xf5c   : > { %v2243_v51 = vrot.slane %v2242_v49, 1 }
 0xf5e   : > { %v2244_v60 = vadd.f32 %v2243_v51, %v2242_v49 }
 0xf60   : > { %3001 = vrcp.f32 %v2244_v60 }
 0xf6d   : > { %v3002_v61 = vpop.eup %3001 }
 0xf6e   : > { %v2246_v62 = vmul.f32 %v3002_v61, %v2237_v40 }
 0xf70   : > { %2247 = vxpose.xlu0.b32.start.end [1/1] (short) (narrow) %v2246_v62, 8 }
 0xfec   : > { %v2263_v63 = vpop.trf.xlu0 }
 0xfed   : > { %2934 = vmatmul.mubr.msk.f32.vlgmr.msra.gmra.mxu0 %vm683_vm5, %v2263_v63 }
 0xfee   : > { %2944 = vmatpush3.msra.mxu0 %v3426_v6  ;;  %2951 = vmatprep.mubr.msk.f32.mxu0 %vm3040_vm0, %v3039_v1 }
 0xfef   : > { %2945 = vmatprep.subr.mxu0 %v3039_v1 }
 0xff0   : > { %2946 = vmatpush3.msra.mxu0 %v3431_v19 }
 0xff1   : > { %2947 = vmatprep.subr.mxu0 %v3039_v1 }
 0xff2   : > { %2948 = vmatpush3.msra.mxu0 %v3440_v7 }
 0xff3   : > { %2949 = vmatprep.subr.mxu0 %v3039_v1 }
 0xff4   : > { %2950 = vmatpush3.msra.mxu0 %v3447_v10 }
0x10ad   : > { %v2348_v15 = vpop.f32.mrf.mxu0 }
0x10ae   : > { %2941 = vmatmul.mubr.msk.f32.vlgmr.msra.gmra.mxu1 %vm609_vm4, %v2348_v15 }
0x10af   : > { %v2935_v0 = vpop.f32.mrf.mxu0 }
0x116e   : > { %v2421_v6 = vpop.f32.mrf.mxu1 }
0x116f   : > { %v2422_v2 = vadd.f32 %v3454_v12, %v2421_v6 }
0x1170   : > { %v2942_v53 = vpop.f32.mrf.mxu1 }
0x1171   : > { %2426 = vrot.lane.b32.xlu1 %v2422_v2, %s3042_s24 }
0x11e3   : > { %v2427_v19 = vpop.permute.xlu1 %2426 }
0x11e4   : > { %v2429_v3 = vsel %vm293_vm11, %v2422_v2, %v2427_v19 }
0x11e5   : > { %vm2430_vm0 = vcmp.ge.f32.partialorder %v2429_v3, 0.0  ;;  %v2431_v1 = vmul.f32 %v2429_v3, %v3461_v35 }
0x11e7   : > { %v2432_v7 = vsel %vm2430_vm0, %v2429_v3, %v2431_v1 }
0x11e8   : > { %2952 = vmatmul.mubr.msk.f32.vlgmr.msra.gmra.mxu0 %vm211_vm1, %v2432_v7 }
0x12a8   : > { %v2502_v10 = vpop.f32.mrf.mxu0 }
0x12a9   : > { %v2503_v48 = vadd.f32 %v3481_v42, %v2502_v10 }
0x12aa   : > { %v2953_v4 = vpop.f32.mrf.mxu0 }
0x12ab   : > { %v2507_v14 = vrot.slane %v2503_v48, 1 }
0x12ad   : > { %v2509_v12 = vsel %vm1263_vm14, %v2503_v48, %v2507_v14 }
0x12ae   : > { %v2510_v16 = vsel %vm378_vm2, %v2509_v12, 0.0 }
0x12af   : > { %2512 = vrot.lane.b32.xlu1 %v2510_v16, %s3043_s5 }
0x1321   : > { %v2513_v50 = vpop.permute.xlu1 %2512 }
0x1322   : > { %v2515_v35 = vsel %vm683_vm5, %v3569_v11, %v2513_v50 }
0x1323   : > { %v2517_v17 = vsel %vm2516_vm3, %v2515_v35, 0.0 }
0x1324   : > { %2518 = vst [vmem:[%s150_s14] sm:$0xff] %v2517_v17 }
0x1325 PF: > { %s24_s1 = sadd.s32 1, %s3035_s1  }
0x1326   : > { %p21_p1 = scmp.ge.s32.totalorder %s24_s1, 4  }
0x1328   :  { %23 = sbr.rel (!%p21_p1) target bundleno = 26 (0x1a), region = 58 }

</bundles_post_ra>
